<compile_context>
chip_gen: v6e
topology: v6e:2x2x1
jax: 0.10.0
libtpu: 0.0.40
codegen_flags: <defaults>
</compile_context>

<pallas_src>
import functools

import jax
import jax.numpy as jnp
import numpy as np
from jax.experimental import pallas as pl
from jax.experimental.pallas import tpu as pltpu

GATE_PAD = 128  # each GRU gate gets its own 128-lane (one vreg wide) block


def _gru_kernel(x_ref, p_ref, f_ref, o_ref, *,
                batch, seq_len, input_size, hidden_pad, bhn_row):
    """Whole GRU recurrence + final Linear in one kernel invocation."""
    B, T, I, HP = batch, seq_len, input_size, hidden_pad

    # ---- unpack the packed parameter slab (all slices sublane/lane aligned) ----
    wih = p_ref[pl.ds(0, I), :]                        # (I,  3*HP)  W_ih^T, gate-padded
    whh = p_ref[pl.ds(I, HP), :]                       # (HP, 3*HP)  W_hh^T, gate-padded
    bgx = p_ref[pl.ds(I + HP, 1), :]                   # (1,  3*HP)  b_ih+b_hh (r,z), b_ih (n)
    bhn = p_ref[pl.ds(bhn_row, 1), pl.ds(2 * HP, HP)]  # (1,  HP)    b_hh for n gate

    # ---- input projection for ALL time steps at once (single MXU call) ----
    # x rows are time-major (t, b): step t is a contiguous B-row static slice.
    gx_all = (jnp.dot(x_ref[...], wih, preferred_element_type=jnp.float32)
              + bgx)                                   # (T*B, 3*HP)

    bhn_b = jnp.broadcast_to(bhn, (B, HP))             # hoisted broadcast

    # ---- serial recurrence, fully unrolled (T static & small) ----
    h = jnp.zeros((B, HP), jnp.float32)
    for t in range(T):
        gx = gx_all[t * B:(t + 1) * B, :]                               # (B, 3*HP)
        gh = jnp.dot(h, whh, preferred_element_type=jnp.float32)        # (B, 3*HP)
        r = jax.nn.sigmoid(gx[:, 0 * HP:1 * HP] + gh[:, 0 * HP:1 * HP])
        z = jax.nn.sigmoid(gx[:, 1 * HP:2 * HP] + gh[:, 1 * HP:2 * HP])
        n = jnp.tanh(gx[:, 2 * HP:3 * HP] + r * (gh[:, 2 * HP:3 * HP] + bhn_b))
        h = (1.0 - z) * n + z * h
    # Padded lanes (H..HP): gx=gh=0 -> r=z=0.5, n=tanh(0)=0, h stays exactly 0.

    # ---- fc(out[:, -1, :]) ----
    fcw = f_ref[pl.ds(0, HP), :]                       # (HP, O), rows H..HP are zero
    fcb = f_ref[pl.ds(HP, 1), :]                       # (1, O)
    y = jnp.dot(h, fcw, preferred_element_type=jnp.float32) + fcb
    o_ref[...] = y.astype(o_ref.dtype)


def pack_gru_params(w_ih, w_hh, b_ih, b_hh, fc_w, fc_b):
    """ONE-TIME parameter prep (keep out of the per-call path).

    Pads each gate to its own 128-lane block and packs everything into
    two arrays so the kernel needs only 2 parameter DMAs.
    """
    w_ih, w_hh = np.asarray(w_ih), np.asarray(w_hh)
    b_ih, b_hh = np.asarray(b_ih), np.asarray(b_hh)
    fc_w, fc_b = np.asarray(fc_w), np.asarray(fc_b)

    H = w_hh.shape[1]
    I = w_ih.shape[1]
    O = fc_w.shape[0]
    HP = GATE_PAD
    assert H <= HP, "hidden_size must fit in one 128-lane gate block"

    bhn_row = ((I + HP + 1 + 7) // 8) * 8          # keep the b_hh_n row sublane aligned
    P = np.zeros((bhn_row + 1, 3 * HP), np.float32)
    for g in range(3):                             # PyTorch gate order: r, z, n
        P[0:I, g * HP:g * HP + H] = w_ih[g * H:(g + 1) * H, :].T       # W_ih^T
        P[I:I + H, g * HP:g * HP + H] = w_hh[g * H:(g + 1) * H, :].T   # W_hh^T
    # r/z gates: fold b_ih + b_hh; n gate: only b_ih (b_hh_n is scaled by r).
    P[I + HP, 0 * HP:0 * HP + H] = b_ih[0 * H:1 * H] + b_hh[0 * H:1 * H]
    P[I + HP, 1 * HP:1 * HP + H] = b_ih[1 * H:2 * H] + b_hh[1 * H:2 * H]
    P[I + HP, 2 * HP:2 * HP + H] = b_ih[2 * H:3 * H]
    P[bhn_row, 2 * HP:2 * HP + H] = b_hh[2 * H:3 * H]

    F = np.zeros((HP + 1, O), np.float32)
    F[0:H, :] = fc_w.T                             # fc weight, hidden axis padded to HP
    F[HP, :] = fc_b
    meta = dict(input_size=I, out_size=O, bhn_row=bhn_row, hidden_pad=HP)
    return jnp.asarray(P), jnp.asarray(F), meta


def gru_forward(x_bsf, P, F, *, out_size, bhn_row, input_size, hidden_pad=GATE_PAD):
    """x_bsf: (B, T, I) batch-first, like the PyTorch module's input."""
    B, T, I = x_bsf.shape
    assert I == input_size

    # Time-major rows (t, b): each recurrence step reads a contiguous row slice.
    x_tm = jnp.swapaxes(x_bsf, 0, 1).reshape(T * B, I)

    kernel = functools.partial(_gru_kernel, batch=B, seq_len=T, input_size=I,
                               hidden_pad=hidden_pad, bhn_row=bhn_row)

    # No grid: 3 operands are DMA'd into VMEM exactly once and stay resident for
    # the whole recurrence (~0.5 MiB total, far below scoped VMEM on v5e/v6e/v7x).
    vmem = pl.BlockSpec(memory_space=pltpu.MemorySpace.VMEM)
    return pl.pallas_call(
        kernel,
        out_shape=jax.ShapeDtypeStruct((B, out_size), jnp.float32),
        in_specs=[vmem, vmem, vmem],
        out_specs=vmem,
    )(x_tm, P, F)


def gru_reference(x, w_ih, w_hh, b_ih, b_hh, fc_w, fc_b):
    """Pure-JAX reference with PyTorch GRU semantics (gate order r, z, n)."""
    H = w_hh.shape[1]

    def step(h, x_t):
        gx = x_t @ w_ih.T + b_ih
        gh = h @ w_hh.T + b_hh
        r = jax.nn.sigmoid(gx[:, :H] + gh[:, :H])
        z = jax.nn.sigmoid(gx[:, H:2 * H] + gh[:, H:2 * H])
        n = jnp.tanh(gx[:, 2 * H:] + r * gh[:, 2 * H:])
        return (1.0 - z) * n + z * h, None

    h0 = jnp.zeros((x.shape[0], H), jnp.float32)
    h_last, _ = jax.lax.scan(step, h0, jnp.transpose(x, (1, 0, 2)))
    return h_last @ fc_w.T + fc_b


if __name__ == "__main__":
    # config equivalent: input_size=8, hidden_size=32, num_layers=1,
    # batch_first=True, bidirectional=False, output_size=4
    B, T, I, H, O = 2, 8, 8, 32, 4

    key = jax.random.PRNGKey(0)
    ks = jax.random.split(key, 8)
    k = 1.0 / np.sqrt(H)  # PyTorch GRU/Linear default init range

    x = jax.random.normal(ks[0], (B, T, I), jnp.float32)
    w_ih = jax.random.uniform(ks[1], (3 * H, I), jnp.float32, -k, k)
    w_hh = jax.random.uniform(ks[2], (3 * H, H), jnp.float32, -k, k)
    b_ih = jax.random.uniform(ks[3], (3 * H,), jnp.float32, -k, k)
    b_hh = jax.random.uniform(ks[4], (3 * H,), jnp.float32, -k, k)
    fc_w = jax.random.uniform(ks[5], (O, H), jnp.float32, -k, k)
    fc_b = jax.random.uniform(ks[6], (O,), jnp.float32, -k, k)

    # One-time parameter packing (kept off the per-call path in steady state).
    P, F, meta = pack_gru_params(w_ih, w_hh, b_ih, b_hh, fc_w, fc_b)

    out = gru_forward(x, P, F,
                      out_size=meta["out_size"], bhn_row=meta["bhn_row"],
                      input_size=meta["input_size"], hidden_pad=meta["hidden_pad"])
    out = jax.block_until_ready(out)

    ref = gru_reference(x, w_ih, w_hh, b_ih, b_hh, fc_w, fc_b)
    np.testing.assert_allclose(np.asarray(out), np.asarray(ref), rtol=1e-5, atol=1e-5)

    assert out.shape == (B, O)
    print("KERNEL_OK")
</pallas_src>

<mosaic_0001>
module attributes {stable_mosaic.version = 11 : i64} {
  func.func @_gru_kernel(%arg0: memref<16x8xf32, #tpu.memory_space<vmem>>, %arg1: memref<145x384xf32, #tpu.memory_space<vmem>>, %arg2: memref<129x4xf32, #tpu.memory_space<vmem>>, %arg3: memref<2x4xf32, #tpu.memory_space<vmem>>) attributes {dimension_semantics = [], scalar_prefetch = 0 : i64, scratch_operands = 0 : i64, tpu.core_type = #tpu.core_type<tc>} {
    %c0 = arith.constant 0 : index
    %c0_0 = arith.constant 0 : index
    %0 = vector.load %arg1[%c0, %c0_0] : memref<145x384xf32, #tpu.memory_space<vmem>>, vector<8x384xf32>
    %c8 = arith.constant 8 : index
    %c0_1 = arith.constant 0 : index
    %1 = vector.load %arg1[%c8, %c0_1] : memref<145x384xf32, #tpu.memory_space<vmem>>, vector<128x384xf32>
    %c136 = arith.constant 136 : index
    %c0_2 = arith.constant 0 : index
    %2 = vector.load %arg1[%c136, %c0_2] : memref<145x384xf32, #tpu.memory_space<vmem>>, vector<1x384xf32>
    %c144 = arith.constant 144 : index
    %c256 = arith.constant 256 : index
    %3 = vector.load %arg1[%c144, %c256] : memref<145x384xf32, #tpu.memory_space<vmem>>, vector<1x128xf32>
    %c0_3 = arith.constant 0 : index
    %c0_4 = arith.constant 0 : index
    %4 = vector.load %arg0[%c0_3, %c0_4] : memref<16x8xf32, #tpu.memory_space<vmem>>, vector<16x8xf32>
    %cst = arith.constant dense<0.000000e+00> : vector<16x384xf32>
    %5 = tpu.matmul %4, %0, %cst {dimension_numbers = #tpu.dot_dimension_numbers<[1], [0], [0], [1], [0, 0, 1, 1], [], []>} : vector<16x8xf32>, vector<8x384xf32>, vector<16x384xf32> -> vector<16x384xf32>
    %6 = vector.broadcast %2 : vector<1x384xf32> to vector<16x384xf32>
    %7 = arith.addf %5, %6 : vector<16x384xf32>
    %8 = vector.shape_cast %3 : vector<1x128xf32> to vector<1x128xf32>
    %9 = vector.broadcast %8 : vector<1x128xf32> to vector<2x128xf32>
    %cst_5 = arith.constant 0.000000e+00 : f32
    %10 = vector.broadcast %cst_5 : f32 to vector<2x128xf32>
    %11 = vector.extract_strided_slice %7 {offsets = [0, 0], sizes = [2, 384], strides = [1, 1]} : vector<16x384xf32> to vector<2x384xf32>
    %cst_6 = arith.constant dense<0.000000e+00> : vector<2x384xf32>
    %12 = tpu.matmul %10, %1, %cst_6 {dimension_numbers = #tpu.dot_dimension_numbers<[1], [0], [0], [1], [0, 0, 1, 1], [], []>} : vector<2x128xf32>, vector<128x384xf32>, vector<2x384xf32> -> vector<2x384xf32>
    %13 = vector.extract_strided_slice %11 {offsets = [0, 0], sizes = [2, 128], strides = [1, 1]} : vector<2x384xf32> to vector<2x128xf32>
    %14 = vector.extract_strided_slice %12 {offsets = [0, 0], sizes = [2, 128], strides = [1, 1]} : vector<2x384xf32> to vector<2x128xf32>
    %15 = arith.addf %13, %14 : vector<2x128xf32>
    %16 = arith.negf %15 : vector<2x128xf32>
    %17 = math.exp %16 : vector<2x128xf32>
    %cst_7 = arith.constant 1.000000e+00 : f32
    %18 = vector.broadcast %cst_7 : f32 to vector<2x128xf32>
    %19 = arith.addf %18, %17 : vector<2x128xf32>
    %20 = arith.divf %18, %19 : vector<2x128xf32>
    %21 = vector.extract_strided_slice %11 {offsets = [0, 128], sizes = [2, 128], strides = [1, 1]} : vector<2x384xf32> to vector<2x128xf32>
    %22 = vector.extract_strided_slice %12 {offsets = [0, 128], sizes = [2, 128], strides = [1, 1]} : vector<2x384xf32> to vector<2x128xf32>
    %23 = arith.addf %21, %22 : vector<2x128xf32>
    %24 = arith.negf %23 : vector<2x128xf32>
    %25 = math.exp %24 : vector<2x128xf32>
    %cst_8 = arith.constant 1.000000e+00 : f32
    %26 = vector.broadcast %cst_8 : f32 to vector<2x128xf32>
    %27 = arith.addf %26, %25 : vector<2x128xf32>
    %28 = arith.divf %26, %27 : vector<2x128xf32>
    %29 = vector.extract_strided_slice %11 {offsets = [0, 256], sizes = [2, 128], strides = [1, 1]} : vector<2x384xf32> to vector<2x128xf32>
    %30 = vector.extract_strided_slice %12 {offsets = [0, 256], sizes = [2, 128], strides = [1, 1]} : vector<2x384xf32> to vector<2x128xf32>
    %31 = arith.addf %30, %9 : vector<2x128xf32>
    %32 = arith.mulf %20, %31 : vector<2x128xf32>
    %33 = arith.addf %29, %32 : vector<2x128xf32>
    %34 = math.tanh %33 : vector<2x128xf32>
    %cst_9 = arith.constant 1.000000e+00 : f32
    %35 = vector.broadcast %cst_9 : f32 to vector<2x128xf32>
    %36 = arith.subf %35, %28 : vector<2x128xf32>
    %37 = arith.mulf %36, %34 : vector<2x128xf32>
    %38 = arith.mulf %28, %10 : vector<2x128xf32>
    %39 = arith.addf %37, %38 : vector<2x128xf32>
    %40 = vector.extract_strided_slice %7 {offsets = [2, 0], sizes = [2, 384], strides = [1, 1]} : vector<16x384xf32> to vector<2x384xf32>
    %cst_10 = arith.constant dense<0.000000e+00> : vector<2x384xf32>
    %41 = tpu.matmul %39, %1, %cst_10 {dimension_numbers = #tpu.dot_dimension_numbers<[1], [0], [0], [1], [0, 0, 1, 1], [], []>} : vector<2x128xf32>, vector<128x384xf32>, vector<2x384xf32> -> vector<2x384xf32>
    %42 = vector.extract_strided_slice %40 {offsets = [0, 0], sizes = [2, 128], strides = [1, 1]} : vector<2x384xf32> to vector<2x128xf32>
    %43 = vector.extract_strided_slice %41 {offsets = [0, 0], sizes = [2, 128], strides = [1, 1]} : vector<2x384xf32> to vector<2x128xf32>
    %44 = arith.addf %42, %43 : vector<2x128xf32>
    %45 = arith.negf %44 : vector<2x128xf32>
    %46 = math.exp %45 : vector<2x128xf32>
    %cst_11 = arith.constant 1.000000e+00 : f32
    %47 = vector.broadcast %cst_11 : f32 to vector<2x128xf32>
    %48 = arith.addf %47, %46 : vector<2x128xf32>
    %49 = arith.divf %47, %48 : vector<2x128xf32>
    %50 = vector.extract_strided_slice %40 {offsets = [0, 128], sizes = [2, 128], strides = [1, 1]} : vector<2x384xf32> to vector<2x128xf32>
    %51 = vector.extract_strided_slice %41 {offsets = [0, 128], sizes = [2, 128], strides = [1, 1]} : vector<2x384xf32> to vector<2x128xf32>
    %52 = arith.addf %50, %51 : vector<2x128xf32>
    %53 = arith.negf %52 : vector<2x128xf32>
    %54 = math.exp %53 : vector<2x128xf32>
    %cst_12 = arith.constant 1.000000e+00 : f32
    %55 = vector.broadcast %cst_12 : f32 to vector<2x128xf32>
    %56 = arith.addf %55, %54 : vector<2x128xf32>
    %57 = arith.divf %55, %56 : vector<2x128xf32>
    %58 = vector.extract_strided_slice %40 {offsets = [0, 256], sizes = [2, 128], strides = [1, 1]} : vector<2x384xf32> to vector<2x128xf32>
    %59 = vector.extract_strided_slice %41 {offsets = [0, 256], sizes = [2, 128], strides = [1, 1]} : vector<2x384xf32> to vector<2x128xf32>
    %60 = arith.addf %59, %9 : vector<2x128xf32>
    %61 = arith.mulf %49, %60 : vector<2x128xf32>
    %62 = arith.addf %58, %61 : vector<2x128xf32>
    %63 = math.tanh %62 : vector<2x128xf32>
    %cst_13 = arith.constant 1.000000e+00 : f32
    %64 = vector.broadcast %cst_13 : f32 to vector<2x128xf32>
    %65 = arith.subf %64, %57 : vector<2x128xf32>
    %66 = arith.mulf %65, %63 : vector<2x128xf32>
    %67 = arith.mulf %57, %39 : vector<2x128xf32>
    %68 = arith.addf %66, %67 : vector<2x128xf32>
    %69 = vector.extract_strided_slice %7 {offsets = [4, 0], sizes = [2, 384], strides = [1, 1]} : vector<16x384xf32> to vector<2x384xf32>
    %cst_14 = arith.constant dense<0.000000e+00> : vector<2x384xf32>
    %70 = tpu.matmul %68, %1, %cst_14 {dimension_numbers = #tpu.dot_dimension_numbers<[1], [0], [0], [1], [0, 0, 1, 1], [], []>} : vector<2x128xf32>, vector<128x384xf32>, vector<2x384xf32> -> vector<2x384xf32>
    %71 = vector.extract_strided_slice %69 {offsets = [0, 0], sizes = [2, 128], strides = [1, 1]} : vector<2x384xf32> to vector<2x128xf32>
    %72 = vector.extract_strided_slice %70 {offsets = [0, 0], sizes = [2, 128], strides = [1, 1]} : vector<2x384xf32> to vector<2x128xf32>
    %73 = arith.addf %71, %72 : vector<2x128xf32>
    %74 = arith.negf %73 : vector<2x128xf32>
    %75 = math.exp %74 : vector<2x128xf32>
    %cst_15 = arith.constant 1.000000e+00 : f32
    %76 = vector.broadcast %cst_15 : f32 to vector<2x128xf32>
    %77 = arith.addf %76, %75 : vector<2x128xf32>
    %78 = arith.divf %76, %77 : vector<2x128xf32>
    %79 = vector.extract_strided_slice %69 {offsets = [0, 128], sizes = [2, 128], strides = [1, 1]} : vector<2x384xf32> to vector<2x128xf32>
    %80 = vector.extract_strided_slice %70 {offsets = [0, 128], sizes = [2, 128], strides = [1, 1]} : vector<2x384xf32> to vector<2x128xf32>
    %81 = arith.addf %79, %80 : vector<2x128xf32>
    %82 = arith.negf %81 : vector<2x128xf32>
    %83 = math.exp %82 : vector<2x128xf32>
    %cst_16 = arith.constant 1.000000e+00 : f32
    %84 = vector.broadcast %cst_16 : f32 to vector<2x128xf32>
    %85 = arith.addf %84, %83 : vector<2x128xf32>
    %86 = arith.divf %84, %85 : vector<2x128xf32>
    %87 = vector.extract_strided_slice %69 {offsets = [0, 256], sizes = [2, 128], strides = [1, 1]} : vector<2x384xf32> to vector<2x128xf32>
    %88 = vector.extract_strided_slice %70 {offsets = [0, 256], sizes = [2, 128], strides = [1, 1]} : vector<2x384xf32> to vector<2x128xf32>
    %89 = arith.addf %88, %9 : vector<2x128xf32>
    %90 = arith.mulf %78, %89 : vector<2x128xf32>
    %91 = arith.addf %87, %90 : vector<2x128xf32>
    %92 = math.tanh %91 : vector<2x128xf32>
    %cst_17 = arith.constant 1.000000e+00 : f32
    %93 = vector.broadcast %cst_17 : f32 to vector<2x128xf32>
    %94 = arith.subf %93, %86 : vector<2x128xf32>
    %95 = arith.mulf %94, %92 : vector<2x128xf32>
    %96 = arith.mulf %86, %68 : vector<2x128xf32>
    %97 = arith.addf %95, %96 : vector<2x128xf32>
    %98 = vector.extract_strided_slice %7 {offsets = [6, 0], sizes = [2, 384], strides = [1, 1]} : vector<16x384xf32> to vector<2x384xf32>
    %cst_18 = arith.constant dense<0.000000e+00> : vector<2x384xf32>
    %99 = tpu.matmul %97, %1, %cst_18 {dimension_numbers = #tpu.dot_dimension_numbers<[1], [0], [0], [1], [0, 0, 1, 1], [], []>} : vector<2x128xf32>, vector<128x384xf32>, vector<2x384xf32> -> vector<2x384xf32>
    %100 = vector.extract_strided_slice %98 {offsets = [0, 0], sizes = [2, 128], strides = [1, 1]} : vector<2x384xf32> to vector<2x128xf32>
    %101 = vector.extract_strided_slice %99 {offsets = [0, 0], sizes = [2, 128], strides = [1, 1]} : vector<2x384xf32> to vector<2x128xf32>
    %102 = arith.addf %100, %101 : vector<2x128xf32>
    %103 = arith.negf %102 : vector<2x128xf32>
    %104 = math.exp %103 : vector<2x128xf32>
    %cst_19 = arith.constant 1.000000e+00 : f32
    %105 = vector.broadcast %cst_19 : f32 to vector<2x128xf32>
    %106 = arith.addf %105, %104 : vector<2x128xf32>
    %107 = arith.divf %105, %106 : vector<2x128xf32>
    %108 = vector.extract_strided_slice %98 {offsets = [0, 128], sizes = [2, 128], strides = [1, 1]} : vector<2x384xf32> to vector<2x128xf32>
    %109 = vector.extract_strided_slice %99 {offsets = [0, 128], sizes = [2, 128], strides = [1, 1]} : vector<2x384xf32> to vector<2x128xf32>
    %110 = arith.addf %108, %109 : vector<2x128xf32>
    %111 = arith.negf %110 : vector<2x128xf32>
    %112 = math.exp %111 : vector<2x128xf32>
    %cst_20 = arith.constant 1.000000e+00 : f32
    %113 = vector.broadcast %cst_20 : f32 to vector<2x128xf32>
    %114 = arith.addf %113, %112 : vector<2x128xf32>
    %115 = arith.divf %113, %114 : vector<2x128xf32>
    %116 = vector.extract_strided_slice %98 {offsets = [0, 256], sizes = [2, 128], strides = [1, 1]} : vector<2x384xf32> to vector<2x128xf32>
    %117 = vector.extract_strided_slice %99 {offsets = [0, 256], sizes = [2, 128], strides = [1, 1]} : vector<2x384xf32> to vector<2x128xf32>
    %118 = arith.addf %117, %9 : vector<2x128xf32>
    %119 = arith.mulf %107, %118 : vector<2x128xf32>
    %120 = arith.addf %116, %119 : vector<2x128xf32>
    %121 = math.tanh %120 : vector<2x128xf32>
    %cst_21 = arith.constant 1.000000e+00 : f32
    %122 = vector.broadcast %cst_21 : f32 to vector<2x128xf32>
    %123 = arith.subf %122, %115 : vector<2x128xf32>
    %124 = arith.mulf %123, %121 : vector<2x128xf32>
    %125 = arith.mulf %115, %97 : vector<2x128xf32>
    %126 = arith.addf %124, %125 : vector<2x128xf32>
    %127 = vector.extract_strided_slice %7 {offsets = [8, 0], sizes = [2, 384], strides = [1, 1]} : vector<16x384xf32> to vector<2x384xf32>
    %cst_22 = arith.constant dense<0.000000e+00> : vector<2x384xf32>
    %128 = tpu.matmul %126, %1, %cst_22 {dimension_numbers = #tpu.dot_dimension_numbers<[1], [0], [0], [1], [0, 0, 1, 1], [], []>} : vector<2x128xf32>, vector<128x384xf32>, vector<2x384xf32> -> vector<2x384xf32>
    %129 = vector.extract_strided_slice %127 {offsets = [0, 0], sizes = [2, 128], strides = [1, 1]} : vector<2x384xf32> to vector<2x128xf32>
    %130 = vector.extract_strided_slice %128 {offsets = [0, 0], sizes = [2, 128], strides = [1, 1]} : vector<2x384xf32> to vector<2x128xf32>
    %131 = arith.addf %129, %130 : vector<2x128xf32>
    %132 = arith.negf %131 : vector<2x128xf32>
    %133 = math.exp %132 : vector<2x128xf32>
    %cst_23 = arith.constant 1.000000e+00 : f32
    %134 = vector.broadcast %cst_23 : f32 to vector<2x128xf32>
    %135 = arith.addf %134, %133 : vector<2x128xf32>
    %136 = arith.divf %134, %135 : vector<2x128xf32>
    %137 = vector.extract_strided_slice %127 {offsets = [0, 128], sizes = [2, 128], strides = [1, 1]} : vector<2x384xf32> to vector<2x128xf32>
    %138 = vector.extract_strided_slice %128 {offsets = [0, 128], sizes = [2, 128], strides = [1, 1]} : vector<2x384xf32> to vector<2x128xf32>
    %139 = arith.addf %137, %138 : vector<2x128xf32>
    %140 = arith.negf %139 : vector<2x128xf32>
    %141 = math.exp %140 : vector<2x128xf32>
    %cst_24 = arith.constant 1.000000e+00 : f32
    %142 = vector.broadcast %cst_24 : f32 to vector<2x128xf32>
    %143 = arith.addf %142, %141 : vector<2x128xf32>
    %144 = arith.divf %142, %143 : vector<2x128xf32>
    %145 = vector.extract_strided_slice %127 {offsets = [0, 256], sizes = [2, 128], strides = [1, 1]} : vector<2x384xf32> to vector<2x128xf32>
    %146 = vector.extract_strided_slice %128 {offsets = [0, 256], sizes = [2, 128], strides = [1, 1]} : vector<2x384xf32> to vector<2x128xf32>
    %147 = arith.addf %146, %9 : vector<2x128xf32>
    %148 = arith.mulf %136, %147 : vector<2x128xf32>
    %149 = arith.addf %145, %148 : vector<2x128xf32>
    %150 = math.tanh %149 : vector<2x128xf32>
    %cst_25 = arith.constant 1.000000e+00 : f32
    %151 = vector.broadcast %cst_25 : f32 to vector<2x128xf32>
    %152 = arith.subf %151, %144 : vector<2x128xf32>
    %153 = arith.mulf %152, %150 : vector<2x128xf32>
    %154 = arith.mulf %144, %126 : vector<2x128xf32>
    %155 = arith.addf %153, %154 : vector<2x128xf32>
    %156 = vector.extract_strided_slice %7 {offsets = [10, 0], sizes = [2, 384], strides = [1, 1]} : vector<16x384xf32> to vector<2x384xf32>
    %cst_26 = arith.constant dense<0.000000e+00> : vector<2x384xf32>
    %157 = tpu.matmul %155, %1, %cst_26 {dimension_numbers = #tpu.dot_dimension_numbers<[1], [0], [0], [1], [0, 0, 1, 1], [], []>} : vector<2x128xf32>, vector<128x384xf32>, vector<2x384xf32> -> vector<2x384xf32>
    %158 = vector.extract_strided_slice %156 {offsets = [0, 0], sizes = [2, 128], strides = [1, 1]} : vector<2x384xf32> to vector<2x128xf32>
    %159 = vector.extract_strided_slice %157 {offsets = [0, 0], sizes = [2, 128], strides = [1, 1]} : vector<2x384xf32> to vector<2x128xf32>
    %160 = arith.addf %158, %159 : vector<2x128xf32>
    %161 = arith.negf %160 : vector<2x128xf32>
    %162 = math.exp %161 : vector<2x128xf32>
    %cst_27 = arith.constant 1.000000e+00 : f32
    %163 = vector.broadcast %cst_27 : f32 to vector<2x128xf32>
    %164 = arith.addf %163, %162 : vector<2x128xf32>
    %165 = arith.divf %163, %164 : vector<2x128xf32>
    %166 = vector.extract_strided_slice %156 {offsets = [0, 128], sizes = [2, 128], strides = [1, 1]} : vector<2x384xf32> to vector<2x128xf32>
    %167 = vector.extract_strided_slice %157 {offsets = [0, 128], sizes = [2, 128], strides = [1, 1]} : vector<2x384xf32> to vector<2x128xf32>
    %168 = arith.addf %166, %167 : vector<2x128xf32>
    %169 = arith.negf %168 : vector<2x128xf32>
    %170 = math.exp %169 : vector<2x128xf32>
    %cst_28 = arith.constant 1.000000e+00 : f32
    %171 = vector.broadcast %cst_28 : f32 to vector<2x128xf32>
    %172 = arith.addf %171, %170 : vector<2x128xf32>
    %173 = arith.divf %171, %172 : vector<2x128xf32>
    %174 = vector.extract_strided_slice %156 {offsets = [0, 256], sizes = [2, 128], strides = [1, 1]} : vector<2x384xf32> to vector<2x128xf32>
    %175 = vector.extract_strided_slice %157 {offsets = [0, 256], sizes = [2, 128], strides = [1, 1]} : vector<2x384xf32> to vector<2x128xf32>
    %176 = arith.addf %175, %9 : vector<2x128xf32>
    %177 = arith.mulf %165, %176 : vector<2x128xf32>
    %178 = arith.addf %174, %177 : vector<2x128xf32>
    %179 = math.tanh %178 : vector<2x128xf32>
    %cst_29 = arith.constant 1.000000e+00 : f32
    %180 = vector.broadcast %cst_29 : f32 to vector<2x128xf32>
    %181 = arith.subf %180, %173 : vector<2x128xf32>
    %182 = arith.mulf %181, %179 : vector<2x128xf32>
    %183 = arith.mulf %173, %155 : vector<2x128xf32>
    %184 = arith.addf %182, %183 : vector<2x128xf32>
    %185 = vector.extract_strided_slice %7 {offsets = [12, 0], sizes = [2, 384], strides = [1, 1]} : vector<16x384xf32> to vector<2x384xf32>
    %cst_30 = arith.constant dense<0.000000e+00> : vector<2x384xf32>
    %186 = tpu.matmul %184, %1, %cst_30 {dimension_numbers = #tpu.dot_dimension_numbers<[1], [0], [0], [1], [0, 0, 1, 1], [], []>} : vector<2x128xf32>, vector<128x384xf32>, vector<2x384xf32> -> vector<2x384xf32>
    %187 = vector.extract_strided_slice %185 {offsets = [0, 0], sizes = [2, 128], strides = [1, 1]} : vector<2x384xf32> to vector<2x128xf32>
    %188 = vector.extract_strided_slice %186 {offsets = [0, 0], sizes = [2, 128], strides = [1, 1]} : vector<2x384xf32> to vector<2x128xf32>
    %189 = arith.addf %187, %188 : vector<2x128xf32>
    %190 = arith.negf %189 : vector<2x128xf32>
    %191 = math.exp %190 : vector<2x128xf32>
    %cst_31 = arith.constant 1.000000e+00 : f32
    %192 = vector.broadcast %cst_31 : f32 to vector<2x128xf32>
    %193 = arith.addf %192, %191 : vector<2x128xf32>
    %194 = arith.divf %192, %193 : vector<2x128xf32>
    %195 = vector.extract_strided_slice %185 {offsets = [0, 128], sizes = [2, 128], strides = [1, 1]} : vector<2x384xf32> to vector<2x128xf32>
    %196 = vector.extract_strided_slice %186 {offsets = [0, 128], sizes = [2, 128], strides = [1, 1]} : vector<2x384xf32> to vector<2x128xf32>
    %197 = arith.addf %195, %196 : vector<2x128xf32>
    %198 = arith.negf %197 : vector<2x128xf32>
    %199 = math.exp %198 : vector<2x128xf32>
    %cst_32 = arith.constant 1.000000e+00 : f32
    %200 = vector.broadcast %cst_32 : f32 to vector<2x128xf32>
    %201 = arith.addf %200, %199 : vector<2x128xf32>
    %202 = arith.divf %200, %201 : vector<2x128xf32>
    %203 = vector.extract_strided_slice %185 {offsets = [0, 256], sizes = [2, 128], strides = [1, 1]} : vector<2x384xf32> to vector<2x128xf32>
    %204 = vector.extract_strided_slice %186 {offsets = [0, 256], sizes = [2, 128], strides = [1, 1]} : vector<2x384xf32> to vector<2x128xf32>
    %205 = arith.addf %204, %9 : vector<2x128xf32>
    %206 = arith.mulf %194, %205 : vector<2x128xf32>
    %207 = arith.addf %203, %206 : vector<2x128xf32>
    %208 = math.tanh %207 : vector<2x128xf32>
    %cst_33 = arith.constant 1.000000e+00 : f32
    %209 = vector.broadcast %cst_33 : f32 to vector<2x128xf32>
    %210 = arith.subf %209, %202 : vector<2x128xf32>
    %211 = arith.mulf %210, %208 : vector<2x128xf32>
    %212 = arith.mulf %202, %184 : vector<2x128xf32>
    %213 = arith.addf %211, %212 : vector<2x128xf32>
    %214 = vector.extract_strided_slice %7 {offsets = [14, 0], sizes = [2, 384], strides = [1, 1]} : vector<16x384xf32> to vector<2x384xf32>
    %cst_34 = arith.constant dense<0.000000e+00> : vector<2x384xf32>
    %215 = tpu.matmul %213, %1, %cst_34 {dimension_numbers = #tpu.dot_dimension_numbers<[1], [0], [0], [1], [0, 0, 1, 1], [], []>} : vector<2x128xf32>, vector<128x384xf32>, vector<2x384xf32> -> vector<2x384xf32>
    %216 = vector.extract_strided_slice %214 {offsets = [0, 0], sizes = [2, 128], strides = [1, 1]} : vector<2x384xf32> to vector<2x128xf32>
    %217 = vector.extract_strided_slice %215 {offsets = [0, 0], sizes = [2, 128], strides = [1, 1]} : vector<2x384xf32> to vector<2x128xf32>
    %218 = arith.addf %216, %217 : vector<2x128xf32>
    %219 = arith.negf %218 : vector<2x128xf32>
    %220 = math.exp %219 : vector<2x128xf32>
    %cst_35 = arith.constant 1.000000e+00 : f32
    %221 = vector.broadcast %cst_35 : f32 to vector<2x128xf32>
    %222 = arith.addf %221, %220 : vector<2x128xf32>
    %223 = arith.divf %221, %222 : vector<2x128xf32>
    %224 = vector.extract_strided_slice %214 {offsets = [0, 128], sizes = [2, 128], strides = [1, 1]} : vector<2x384xf32> to vector<2x128xf32>
    %225 = vector.extract_strided_slice %215 {offsets = [0, 128], sizes = [2, 128], strides = [1, 1]} : vector<2x384xf32> to vector<2x128xf32>
    %226 = arith.addf %224, %225 : vector<2x128xf32>
    %227 = arith.negf %226 : vector<2x128xf32>
    %228 = math.exp %227 : vector<2x128xf32>
    %cst_36 = arith.constant 1.000000e+00 : f32
    %229 = vector.broadcast %cst_36 : f32 to vector<2x128xf32>
    %230 = arith.addf %229, %228 : vector<2x128xf32>
    %231 = arith.divf %229, %230 : vector<2x128xf32>
    %232 = vector.extract_strided_slice %214 {offsets = [0, 256], sizes = [2, 128], strides = [1, 1]} : vector<2x384xf32> to vector<2x128xf32>
    %233 = vector.extract_strided_slice %215 {offsets = [0, 256], sizes = [2, 128], strides = [1, 1]} : vector<2x384xf32> to vector<2x128xf32>
    %234 = arith.addf %233, %9 : vector<2x128xf32>
    %235 = arith.mulf %223, %234 : vector<2x128xf32>
    %236 = arith.addf %232, %235 : vector<2x128xf32>
    %237 = math.tanh %236 : vector<2x128xf32>
    %cst_37 = arith.constant 1.000000e+00 : f32
    %238 = vector.broadcast %cst_37 : f32 to vector<2x128xf32>
    %239 = arith.subf %238, %231 : vector<2x128xf32>
    %240 = arith.mulf %239, %237 : vector<2x128xf32>
    %241 = arith.mulf %231, %213 : vector<2x128xf32>
    %242 = arith.addf %240, %241 : vector<2x128xf32>
    %c0_38 = arith.constant 0 : index
    %c0_39 = arith.constant 0 : index
    %243 = vector.load %arg2[%c0_38, %c0_39] : memref<129x4xf32, #tpu.memory_space<vmem>>, vector<128x4xf32>
    %c128 = arith.constant 128 : index
    %c0_40 = arith.constant 0 : index
    %244 = vector.load %arg2[%c128, %c0_40] : memref<129x4xf32, #tpu.memory_space<vmem>>, vector<1x4xf32>
    %cst_41 = arith.constant dense<0.000000e+00> : vector<2x4xf32>
    %245 = tpu.matmul %242, %243, %cst_41 {dimension_numbers = #tpu.dot_dimension_numbers<[1], [0], [0], [1], [0, 0, 1, 1], [], []>} : vector<2x128xf32>, vector<128x4xf32>, vector<2x4xf32> -> vector<2x4xf32>
    %246 = vector.broadcast %244 : vector<1x4xf32> to vector<2x4xf32>
    %247 = arith.addf %245, %246 : vector<2x4xf32>
    %c0_42 = arith.constant 0 : index
    %c0_43 = arith.constant 0 : index
    %248 = vector.load %arg3[%c0_42, %c0_43] : memref<2x4xf32, #tpu.memory_space<vmem>>, vector<2x4xf32>
    tpu.vector_store %arg3[%c0_42, %c0_43], %247 {strides = array<i32>} : memref<2x4xf32, #tpu.memory_space<vmem>>, vector<2x4xf32>,
    return
  }
}

</mosaic_0001>

<bundles_post_ra>
// kernel: tpu_custom_call.1
= control target key start
LH: loop header
LB: loop body
LE: loop exit
PB: predicated region body
PF: predicated region fallthrough
CT: control target
= control target key end

     0   :  { %8 = vsyncpa [#allocation3], 0  ;;  %s3356_s0 = inlined_call_operand.vmem [shape: f32[16,8], index: 0, kind: input, shape index: {}]   ;;  %s3357_s1 = inlined_call_operand.hbm [shape: f32[145,384], index: 1, kind: input, shape index: {}]   ;;  %s3358_s2 = inlined_call_operand.vmem [shape: f32[129,4], index: 2, kind: input, shape index: {}]   ;;  %s3359_s3 = inlined_call_operand.hbm [shape: f32[2,4], index: 3, kind: output, shape index: {}]  }
   0x1   :  { %9 = vsyncpa [#allocation4], 0  ;;  %s2434_s12 = smov [#allocation2]  }
   0x2   :  { %s17_s13 = sshll.u32 %s2434_s12, 4  ;;  %s18_s13 = int_to_ptr.vmem [resolvable:$true] %s17_s13 }
   0x3   :  { %s2398_s14 = scalar_lea.vmem %s18_s13, 7296  ;;  %p2403_p1 = scmp.lt.s32.totalorder %s18_s13, %s18_s13 }
   0x4   :  { %p2399_p0 = scmp.ne.s32.totalorder %s18_s13, %s2398_s14  ;;  %p2404_p2 = scmp.lt.s32.totalorder %s2398_s14, %s2398_s14 }
   0x6   :  { %p2405_p3 = por %p2404_p2, %p2403_p1 }
   0x8   :  { %p2406_p4 = pnand %p2405_p3, %p2399_p0 }
   0xa   :  { %2409 = shalt.err (!%p2406_p4)
}
   0xb   :  { %s2435_s15 = smov 384   ;;  %s2436_s16 = smov 24  }
   0xc   :  { %23 = dma.hbm_to_vmem [thread:$0]  %s3357_s1, 7296, %s18_s13, [#allocation3], %s2435_s15, %s2435_s15, %s2436_s16  }
   0xd   :  { %2430 = dma.done.wait [#allocation3], 7296  }
   0xe   :  { %2431 = vsyncadd [#allocation3], 4294960000  ;;  %v3364_v0 = vmov 0.0   ;;  %v2465_v1 = vld [vmem:[#allocation2 + $0x188] sm:$0xff]  ;;  %v2467_v2 = vld [vmem:[#allocation2 + $0x180] sm:$0xff]  ;;  %vm101_vm0 = vcmask 64512   ;;  %v86_v54 = vlaneseq }
   0xf   :  { %172 = vmatprep.mubr.f32.mxu1 %v3364_v0  ;;  %324 = vmatprep.mubr.f32.mxu0 %v3364_v0  ;;  %3385 = vst [vmem:[#allocation8_spill] sm:$0xff] %v2465_v1  ;;  %v2469_v3 = vld [vmem:[#allocation2 + $0x170] sm:$0xff]  ;;  %v2472_v4 = vld [vmem:[#allocation2 + $0x168] sm:$0xff]  ;;  %v2475_v5 = vld [vmem:[#allocation2 + $0x158] sm:$0xff]  ;;  %vm2438_vm1 = vmmov 0   ;;  %s2439_s26 = smov [#allocation5]  }
  0x10   :  { %260 = vmatprep.subr.mxu0 %v2465_v1  ;;  %v2478_v6 = vld [vmem:[#allocation2 + $0x150] sm:$0xff]  ;;  %v2481_v7 = vld [vmem:[#allocation2 + $0x140] sm:$0xff]  ;;  %v2484_v8 = vld [vmem:[#allocation2 + $0x138] sm:$0xff]  ;;  %v87_v55 = vshrl.u32 %v86_v54, 7  ;;  %s1749_s27 = sshll.u32 %s2439_s26, 4  ;;  %vm1741_vm2 = vcmask 25600   ;;  %s1750_s27 = int_to_ptr.vmem [resolvable:$true] %s1749_s27 }
  0x11   :  { %261 = vmatpush1.msra.mxu0 %v2467_v2  ;;  %v2487_v9 = vld [vmem:[#allocation2 + $0x128] sm:$0xff]  ;;  %v2490_v10 = vld [vmem:[#allocation2 + $0x120] sm:$0xff]  ;;  %v2493_v13 = vld [vmem:[#allocation2 + $0x110] sm:$0xff]  ;;  %s2410_s28 = scalar_lea.vmem %s1750_s27, 32  ;;  %p2415_p6 = scmp.lt.s32.totalorder %s1750_s27, %s1750_s27 }
  0x12   :  { %262 = vmatprep.subr.mxu0 %v2469_v3  ;;  %v30_v11 = vld [vmem:[#allocation2 + $0x8] sm:$0xff]  ;;  %v29_v12 = vld [vmem:[#allocation2] sm:$0xff]  ;;  %v31_v16 = vld [vmem:[#allocation2 + $0x10] sm:$0xff]  ;;  %v88_v56 = vsub.s32 0, %v87_v55  ;;  %v92_v59 = vsub.s32 1, %v87_v55  ;;  %v96_v60 = vsub.s32 2, %v87_v55  ;;  %p2411_p5 = scmp.ne.s32.totalorder %s1750_s27, %s2410_s28  ;;  %p2416_p7 = scmp.lt.s32.totalorder %s2410_s28, %s2410_s28 }
  0x13   :  { %263 = vmatpush1.msra.mxu0 %v2472_v4  ;;  %138 = vmatprep.subr.mxu1 %v30_v11  ;;  %v83_v14 = vld [vmem:[%s3356_s0] sm:$0xff]  ;;  %v2499_v15 = vld [vmem:[#allocation2 + $0x108] sm:$0xff]  ;;  %v2502_v17 = vld [vmem:[#allocation2 + $0xf8] sm:$0xff] }
  0x14   :  { %264 = vmatprep.subr.mxu0 %v2475_v5  ;;  %139 = vmatpush1.msra.mxu1 %v29_v12  ;;  %v2506_v18 = vld [vmem:[#allocation2 + $0xf0] sm:$0xff]  ;;  %v84_v19 = vld [vmem:[%s3356_s0 + $0x8] sm:$0xff]  ;;  %v2512_v20 = vld [vmem:[#allocation2 + $0xe0] sm:$0xff]  ;;  %p2417_p8 = por %p2416_p7, %p2415_p6 }
  0x15   :  { %265 = vmatpush1.msra.mxu0 %v2478_v6  ;;  %1758 = vmatmul.mubr.msk.f32.vlgmr.msra.gmra.mxu1 %vm101_vm0, %v83_v14  ;;  %v2515_v21 = vld [vmem:[#allocation2 + $0xd8] sm:$0xff]  ;;  %v2519_v22 = vld [vmem:[#allocation2 + $0xc8] sm:$0xff]  ;;  %v2523_v23 = vld [vmem:[#allocation2 + $0xc0] sm:$0xff] }
  0x16   :  { %266 = vmatprep.subr.mxu0 %v2481_v7  ;;  %1935 = vmatprep.subr.mxu1 %v31_v16  ;;  %v2527_v24 = vld [vmem:[#allocation2 + $0xb0] sm:$0xff]  ;;  %v2533_v26 = vld [vmem:[#allocation2 + $0xa8] sm:$0xff]  ;;  %v2536_v27 = vld [vmem:[#allocation2 + $0x98] sm:$0xff]  ;;  %p2418_p9 = pnand %p2417_p8, %p2411_p5 }
  0x17   :  { %267 = vmatpush1.msra.mxu0 %v2484_v8  ;;  %1936 = vmatpush3.msra.mxu1 %v31_v16  ;;  %v2530_v25 = vld [vmem:[#allocation2 + $0x190] sm:$0xff]  ;;  %v2539_v28 = vld [vmem:[#allocation2 + $0x178] sm:$0xff]  ;;  %v2546_v30 = vld [vmem:[#allocation2 + $0x80] sm:$0xff] }
  0x18   :  { %268 = vmatprep.subr.mxu0 %v2487_v9  ;;  %178 = vmatprep.mubr.f32.mxu1 %v3364_v0  ;;  %v2542_v29 = vld [vmem:[#allocation2 + $0x90] sm:$0xff]  ;;  %v2549_v31 = vld [vmem:[#allocation2 + $0x160] sm:$0xff]  ;;  %v2552_v32 = vld [vmem:[#allocation2 + $0x78] sm:$0xff] }
  0x19   :  { %269 = vmatpush1.msra.mxu0 %v2490_v10  ;;  %1759 = vmatmul.mubr.msk.f32.gmra.mxu1 %vm101_vm0, %v84_v19  ;;  %v2556_v33 = vld [vmem:[#allocation2 + $0x68] sm:$0xff]  ;;  %v2562_v35 = vld [vmem:[#allocation2 + $0x60] sm:$0xff]  ;;  %v2566_v36 = vld [vmem:[#allocation2 + $0x50] sm:$0xff] }
  0x1a   :  { %270 = vmatprep.subr.mxu0 %v2493_v13  ;;  %1937 = vmatprep.mubr.msk.f32.mxu1 %vm101_vm0, %v83_v14  ;;  %v2559_v34 = vld [vmem:[#allocation2 + $0x148] sm:$0xff]  ;;  %v2569_v37 = vld [vmem:[#allocation2 + $0x130] sm:$0xff]  ;;  %v2576_v39 = vld [vmem:[#allocation2 + $0x38] sm:$0xff] }
  0x1b   :  { %271 = vmatpush1.msra.mxu0 %v2499_v15  ;;  %1940 = vmatprep.subr.mxu1 %v3364_v0  ;;  %v2572_v38 = vld [vmem:[#allocation2 + $0x48] sm:$0xff]  ;;  %3386 = vst [vmem:[#allocation9_spill] sm:$0xff] %v2576_v39  ;;  %v2579_v40 = vld [vmem:[#allocation2 + $0x118] sm:$0xff]  ;;  %v2582_v41 = vld [vmem:[#allocation2 + $0x30] sm:$0xff] }
  0x1c   :  { %272 = vmatprep.subr.mxu0 %v2502_v17  ;;  %3387 = vst [vmem:[#allocation10_spill] sm:$0xff] %v2582_v41  ;;  %v2586_v42 = vld [vmem:[#allocation2 + $0x20] sm:$0xff]  ;;  %v2592_v44 = vld [vmem:[#allocation2 + $0x18] sm:$0xff]  ;;  %v2597_v45 = vld [vmem:[#allocation2 + $0xe8] sm:$0xff] }
  0x1d   :  { %273 = vmatpush1.msra.mxu0 %v2506_v18  ;;  %1938 = vmatmul.mubr.msk.f32.vlgmr.msra.gmra.mxu1 %vm101_vm0, %v84_v19  ;;  %3388 = vst [vmem:[#allocation11_spill] sm:$0xff] %v2586_v42  ;;  %v2589_v43 = vld [vmem:[#allocation2 + $0x100] sm:$0xff]  ;;  %3389 = vst [vmem:[#allocation12_spill] sm:$0xff] %v2592_v44  ;;  %v2603_v46 = vld [vmem:[#allocation2 + $0xd0] sm:$0xff] }
  0x1e   :  { %274 = vmatprep.subr.mxu0 %v2512_v20  ;;  %1941 = vmatpush3.msra.mxu1 %v2530_v25  ;;  %v2608_v47 = vld [vmem:[#allocation2 + $0xb8] sm:$0xff]  ;;  %v2615_v48 = vld [vmem:[#allocation2 + $0xa0] sm:$0xff]  ;;  %v2621_v49 = vld [vmem:[#allocation2 + $0x88] sm:$0xff] }
  0x1f   :  { %275 = vmatpush1.msra.mxu0 %v2515_v21  ;;  %1942 = vmatprep.subr.mxu1 %v3364_v0  ;;  %v2627_v50 = vld [vmem:[#allocation2 + $0x70] sm:$0xff]  ;;  %v2633_v51 = vld [vmem:[#allocation2 + $0x58] sm:$0xff]  ;;  %v2639_v52 = vld [vmem:[#allocation2 + $0x40] sm:$0xff] }
  0x20   :  { %276 = vmatprep.subr.mxu0 %v2519_v22  ;;  %1943 = vmatpush3.msra.mxu1 %v2539_v28  ;;  %3390 = vst [vmem:[#allocation13_spill] sm:$0xff] %v2639_v52  ;;  %v2645_v53 = vld [vmem:[#allocation2 + $0x28] sm:$0xff] }
  0x21   :  { %277 = vmatpush1.msra.mxu0 %v2523_v23  ;;  %1944 = vmatprep.subr.mxu1 %v3364_v0  ;;  %3391 = vst [vmem:[#allocation14_spill] sm:$0xff] %v2645_v53  ;;  %v81_v57 = vld [vmem:[#allocation2 + $0x198] ss:$8 sm:$0x7] }
  0x22   :  { %278 = vmatprep.subr.mxu0 %v2527_v24  ;;  %1945 = vmatpush3.msra.mxu1 %v2549_v31  ;;  %v89_v62 = vrot.slane %v81_v57, %v88_v56  ;;  %v93_v11 = vrot.slane %v81_v57, %v92_v59  ;;  %v97_v14 = vrot.slane %v81_v57, %v96_v60 }
  0x23   :  { %279 = vmatpush1.msra.mxu0 %v2533_v26  ;;  %1946 = vmatprep.subr.mxu1 %v3364_v0 }
  0x24   :  { %280 = vmatprep.subr.mxu0 %v2536_v27  ;;  %1947 = vmatpush3.msra.mxu1 %v2559_v34 }
  0x25   :  { %281 = vmatpush1.msra.mxu0 %v2542_v29  ;;  %1948 = vmatprep.subr.mxu1 %v3364_v0 }
  0x26   :  { %282 = vmatprep.subr.mxu0 %v2546_v30  ;;  %1949 = vmatpush3.msra.mxu1 %v2569_v37 }
  0x27   :  { %283 = vmatpush1.msra.mxu0 %v2552_v32  ;;  %1950 = vmatprep.subr.mxu1 %v3364_v0 }
  0x28   :  { %284 = vmatprep.subr.mxu0 %v2556_v33  ;;  %1951 = vmatpush3.msra.mxu1 %v2579_v40 }
  0x29   :  { %285 = vmatpush1.msra.mxu0 %v2562_v35  ;;  %1952 = vmatprep.subr.mxu1 %v3364_v0 }
  0x2a   :  { %286 = vmatprep.subr.mxu0 %v2566_v36  ;;  %1953 = vmatpush3.msra.mxu1 %v2589_v43 }
  0x2b   :  { %287 = vmatpush1.msra.mxu0 %v2572_v38  ;;  %1954 = vmatprep.subr.mxu1 %v3364_v0 }
  0x2c   :  { %288 = vmatprep.subr.mxu0 %v2576_v39  ;;  %1955 = vmatpush3.msra.mxu1 %v2597_v45 }
  0x2d   :  { %289 = vmatpush1.msra.mxu0 %v2582_v41  ;;  %1956 = vmatprep.subr.mxu1 %v3364_v0 }
  0x2e   :  { %290 = vmatprep.subr.mxu0 %v2586_v42  ;;  %1972 = vmatprep.mubr.msk.f32.mxu1 %vm2438_vm1, %v3364_v0 }
  0x2f   :  { %291 = vmatpush1.msra.mxu0 %v2592_v44  ;;  %1957 = vmatpush3.msra.mxu1 %v2603_v46 }
  0x30   :  { %325 = vmatmul.mubr.f32.vlgmr.msra.gmra.mxu0 %v3364_v0  ;;  %423 = vmatprep.subr.mxu0 %v2465_v1 }
  0x31   :  { %1958 = vmatprep.subr.mxu1 %v3364_v0  ;;  %424 = vmatpush1.msra.mxu0 %v2467_v2 }
  0x32   :  { %1959 = vmatpush3.msra.mxu1 %v2608_v47  ;;  %425 = vmatprep.subr.mxu0 %v2469_v3 }
  0x33   :  { %1960 = vmatprep.subr.mxu1 %v3364_v0  ;;  %426 = vmatpush1.msra.mxu0 %v2472_v4 }
  0x34   :  { %1961 = vmatpush3.msra.mxu1 %v2615_v48  ;;  %427 = vmatprep.subr.mxu0 %v2475_v5 }
  0x35   :  { %1962 = vmatprep.subr.mxu1 %v3364_v0  ;;  %428 = vmatpush1.msra.mxu0 %v2478_v6 }
  0x36   :  { %1963 = vmatpush3.msra.mxu1 %v2621_v49  ;;  %429 = vmatprep.subr.mxu0 %v2481_v7 }
  0x37   :  { %1964 = vmatprep.subr.mxu1 %v3364_v0  ;;  %430 = vmatpush1.msra.mxu0 %v2484_v8 }
  0x38   :  { %1965 = vmatpush3.msra.mxu1 %v2627_v50  ;;  %431 = vmatprep.subr.mxu0 %v2487_v9 }
  0x39   :  { %1966 = vmatprep.subr.mxu1 %v3364_v0  ;;  %432 = vmatpush1.msra.mxu0 %v2490_v10 }
  0x3a   :  { %1967 = vmatpush3.msra.mxu1 %v2633_v51  ;;  %433 = vmatprep.subr.mxu0 %v2493_v13 }
  0x3b   :  { %1968 = vmatprep.subr.mxu1 %v3364_v0  ;;  %434 = vmatpush1.msra.mxu0 %v2499_v15 }
  0x3c   :  { %1969 = vmatpush3.msra.mxu1 %v2639_v52  ;;  %435 = vmatprep.subr.mxu0 %v2502_v17 }
  0x3d   :  { %1970 = vmatprep.subr.mxu1 %v3364_v0  ;;  %436 = vmatpush1.msra.mxu0 %v2506_v18 }
  0x3e   :  { %1971 = vmatpush3.msra.mxu1 %v2645_v53  ;;  %437 = vmatprep.subr.mxu0 %v2512_v20 }
  0x3f   :  { %1973 = vmatmul.mubr.f32.vlgmr.msra.gmra.mxu1 %v3364_v0  ;;  %1975 = vmatprep.subr.mxu1 %v3364_v0 }
  0x40   :  { %1976 = vmatpush3.msra.mxu1 %v2530_v25  ;;  %438 = vmatpush1.msra.mxu0 %v2515_v21 }
  0x41   :  { %1977 = vmatprep.subr.mxu1 %v3364_v0  ;;  %439 = vmatprep.subr.mxu0 %v2519_v22 }
  0x42   :  { %1978 = vmatpush3.msra.mxu1 %v2539_v28  ;;  %440 = vmatpush1.msra.mxu0 %v2523_v23 }
  0x43   :  { %1979 = vmatprep.subr.mxu1 %v3364_v0  ;;  %441 = vmatprep.subr.mxu0 %v2527_v24 }
  0x44   :  { %1980 = vmatpush3.msra.mxu1 %v2549_v31  ;;  %442 = vmatpush1.msra.mxu0 %v2533_v26 }
  0x45   :  { %1981 = vmatprep.subr.mxu1 %v3364_v0  ;;  %443 = vmatprep.subr.mxu0 %v2536_v27 }
  0x46   :  { %1982 = vmatpush3.msra.mxu1 %v2559_v34  ;;  %444 = vmatpush1.msra.mxu0 %v2542_v29 }
  0x47   :  { %1983 = vmatprep.subr.mxu1 %v3364_v0  ;;  %445 = vmatprep.subr.mxu0 %v2546_v30 }
  0x48   :  { %1984 = vmatpush3.msra.mxu1 %v2569_v37  ;;  %446 = vmatpush1.msra.mxu0 %v2552_v32 }
  0x49   :  { %1985 = vmatprep.subr.mxu1 %v3364_v0  ;;  %447 = vmatprep.subr.mxu0 %v2556_v33 }
  0x4a   :  { %1986 = vmatpush3.msra.mxu1 %v2579_v40  ;;  %448 = vmatpush1.msra.mxu0 %v2562_v35 }
  0x4b   :  { %1987 = vmatprep.subr.mxu1 %v3364_v0  ;;  %449 = vmatprep.subr.mxu0 %v2566_v36 }
  0x4c   :  { %1988 = vmatpush3.msra.mxu1 %v2589_v43  ;;  %450 = vmatpush1.msra.mxu0 %v2572_v38 }
  0x4d   :  { %1989 = vmatprep.subr.mxu1 %v3364_v0  ;;  %451 = vmatprep.subr.mxu0 %v2576_v39 }
  0x4e   :  { %1990 = vmatpush3.msra.mxu1 %v2597_v45  ;;  %452 = vmatpush1.msra.mxu0 %v2582_v41 }
  0x4f   :  { %1991 = vmatprep.subr.mxu1 %v3364_v0  ;;  %453 = vmatprep.subr.mxu0 %v2586_v42 }
  0x50   :  { %1992 = vmatpush3.msra.mxu1 %v2603_v46  ;;  %454 = vmatpush1.msra.mxu0 %v2592_v44 }
  0x51   :  { %1993 = vmatprep.subr.mxu1 %v3364_v0  ;;  %487 = vmatprep.mubr.f32.mxu0 %v3364_v0 }
  0x52   :  { %1994 = vmatpush3.msra.mxu1 %v2608_v47  ;;  %2007 = vmatprep.mubr.msk.f32.mxu1 %vm2438_vm1, %v3364_v0 }
  0x53   :  { %1995 = vmatprep.subr.mxu1 %v3364_v0  ;;  %601 = vmatprep.subr.mxu0 %v2465_v1 }
  0x54   :  { %1996 = vmatpush3.msra.mxu1 %v2615_v48 }
  0x55   :  { %1997 = vmatprep.subr.mxu1 %v3364_v0 }
  0x56   :  { %1998 = vmatpush3.msra.mxu1 %v2621_v49 }
  0x57   :  { %1999 = vmatprep.subr.mxu1 %v3364_v0 }
  0x58   :  { %2000 = vmatpush3.msra.mxu1 %v2627_v50 }
  0x59   :  { %2001 = vmatprep.subr.mxu1 %v3364_v0 }
  0x5a   :  { %2002 = vmatpush3.msra.mxu1 %v2633_v51 }
  0x5b   :  { %2003 = vmatprep.subr.mxu1 %v3364_v0 }
  0x5c   :  { %2004 = vmatpush3.msra.mxu1 %v2639_v52 }
  0x5d   :  { %2005 = vmatprep.subr.mxu1 %v3364_v0 }
  0x5e   :  { %2006 = vmatpush3.msra.mxu1 %v2645_v53 }
  0x5f   :  { %2010 = vmatprep.subr.mxu1 %v3364_v0 }
  0xd5   :  { %v174_v58 = vpop.f32.mrf.mxu1 }
  0xd6   :  { %v2715_v0 = vadd.f32 %v174_v58, %v89_v62 }
  0xd7   :  { %v176_v61 = vpop.f32.mrf.mxu1 }
  0xd8   :  { %v2718_v52 = vadd.f32 %v176_v61, %v93_v11 }
  0xd9   :  { %v180_v63 = vpop.f32.mrf.mxu1 }
  0xda   :  { %v2709_v12 = vadd.f32 %v180_v63, %v89_v62  ;;  %v2721_v62 = vld [vmem:[#allocation2 + $0x1c0] ss:$0 sm:$0xff] }
  0xdb   :  { %v182_v16 = vpop.f32.mrf.mxu1 }
  0xdc   :  { %3392 = vst [vmem:[#allocation15_spill] sm:$0xff] %v2709_v12  ;;  %v2711_v19 = vadd.f32 %v182_v16, %v93_v11 }
  0xdd   :  { %v1939_v1 = vpop.f32.mrf.mxu1 }
  0xde   :  { %3393 = vst [vmem:[#allocation16_spill] sm:$0xff] %v2711_v19  ;;  %v2713_v53 = vadd.f32 %v1939_v1, %v97_v14 }
  0xdf   :  { %v251_v57 = vpop.f32.mrf.mxu1 }
  0xe0   :  { %3394 = vst [vmem:[#allocation17_spill] sm:$0xff] %v2713_v53  ;;  %v2724_v61 = vadd.f32 %v251_v57, %v97_v14  ;;  %v3396_v14 = vld [vmem:[#allocation13_spill] sm:$0xff]  ;;  %v3397_v57 = vld [vmem:[#allocation11_spill] sm:$0xff] }
  0xf0   :  { %v326_v54 = vpop.f32.mrf.mxu0 }
  0xf1   :  { %v401_v44 = vadd.f32 %v326_v54, %v2715_v0 }
  0xf2   :  { %v328_v55 = vpop.f32.mrf.mxu0 }
  0xf3   :  { %v1762_v42 = vmul.f32 -1.442695, %v401_v44  ;;  %v408_v56 = vadd.f32 %v328_v55, %v2718_v52 }
  0xf5   :  { %2261 = vpow2.f32 %v1762_v42  ;;  %v1763_v59 = vmul.f32 -1.442695, %v408_v56 }
  0xf7   :  { %2263 = vpow2.f32 %v1763_v59 }
  0xff   :  { %v397_v60 = vpop.f32.mrf.mxu1 }
 0x100   :  { %v415_v44 = vadd.f32 %v397_v60, %v2721_v62  ;;  %v3398_v60 = vld [vmem:[#allocation12_spill] sm:$0xff] }
 0x101   :  { %v1974_v1 = vpop.f32.mrf.mxu1 }
 0x102   :  { %v2262_v63 = vpop.eup %2261 }
 0x103   :  { %v405_v16 = vadd.f32 1.0, %v2262_v63 }
 0x104   :  { %v2264_v58 = vpop.eup %2263 }
 0x105   :  { %2265 = vrcp.f32 %v405_v16  ;;  %v412_v53 = vadd.f32 1.0, %v2264_v58  ;;  %v3399_v58 = vld [vmem:[#allocation14_spill] sm:$0xff] }
 0x107   :  { %2267 = vrcp.f32 %v412_v53  ;;  %v3395_v53 = vmov 0.0  }
 0x112   :  { %v2266_v54 = vpop.eup %2265 }
 0x113   :  { %v416_v42 = vmul.f32 %v2266_v54, %v415_v44  ;;  %v3400_v44 = vld [vmem:[#allocation8_spill] sm:$0xff] }
 0x114   :  { %v2268_v55 = vpop.eup %2267 }
 0x115   :  { %v417_v11 = vadd.f32 %v416_v42, %v2724_v61  ;;  %v419_v56 = vsub.f32 1.0, %v2268_v55  ;;  %v421_v1 = vmul.f32 0.0, %v2268_v55 }
 0x117   :  { %2269 = vtanh.f32 %v417_v11 }
 0x124   :  { %v2270_v59 = vpop.eup %2269 }
 0x125   :  { %v420_v63 = vmul.f32 %v2270_v59, %v419_v56 }
 0x127   :  { %v2727_v16 = vadd.f32 %v421_v1, %v420_v63 }
 0x129   :  { %488 = vmatmul.mubr.f32.vlgmr.msra.gmra.mxu0 %v2727_v16  ;;  %2008 = vmatmul.mubr.f32.vlgmr.msra.gmra.mxu1 %v2727_v16 }
 0x12a   :  { %602 = vmatpush1.msra.mxu0 %v2467_v2  ;;  %2011 = vmatpush3.msra.mxu1 %v2530_v25 }
 0x12b   :  { %603 = vmatprep.subr.mxu0 %v2469_v3  ;;  %2012 = vmatprep.subr.mxu1 %v3395_v53 }
 0x12c   :  { %604 = vmatpush1.msra.mxu0 %v2472_v4  ;;  %2013 = vmatpush3.msra.mxu1 %v2539_v28 }
 0x12d   :  { %605 = vmatprep.subr.mxu0 %v2475_v5  ;;  %2014 = vmatprep.subr.mxu1 %v3395_v53 }
 0x12e   :  { %606 = vmatpush1.msra.mxu0 %v2478_v6  ;;  %2015 = vmatpush3.msra.mxu1 %v2549_v31 }
 0x12f   :  { %607 = vmatprep.subr.mxu0 %v2481_v7  ;;  %2016 = vmatprep.subr.mxu1 %v3395_v53 }
 0x130   :  { %608 = vmatpush1.msra.mxu0 %v2484_v8  ;;  %2017 = vmatpush3.msra.mxu1 %v2559_v34 }
 0x131   :  { %609 = vmatprep.subr.mxu0 %v2487_v9  ;;  %2018 = vmatprep.subr.mxu1 %v3395_v53 }
 0x132   :  { %610 = vmatpush1.msra.mxu0 %v2490_v10  ;;  %2019 = vmatpush3.msra.mxu1 %v2569_v37 }
 0x133   :  { %611 = vmatprep.subr.mxu0 %v2493_v13  ;;  %2020 = vmatprep.subr.mxu1 %v3395_v53 }
 0x134   :  { %612 = vmatpush1.msra.mxu0 %v2499_v15  ;;  %2021 = vmatpush3.msra.mxu1 %v2579_v40 }
 0x135   :  { %613 = vmatprep.subr.mxu0 %v2502_v17  ;;  %2022 = vmatprep.subr.mxu1 %v3395_v53 }
 0x136   :  { %614 = vmatpush1.msra.mxu0 %v2506_v18  ;;  %2023 = vmatpush3.msra.mxu1 %v2589_v43 }
 0x137   :  { %615 = vmatprep.subr.mxu0 %v2512_v20  ;;  %2024 = vmatprep.subr.mxu1 %v3395_v53 }
 0x138   :  { %616 = vmatpush1.msra.mxu0 %v2515_v21  ;;  %2025 = vmatpush3.msra.mxu1 %v2597_v45 }
 0x139   :  { %617 = vmatprep.subr.mxu0 %v2519_v22  ;;  %2026 = vmatprep.subr.mxu1 %v3395_v53 }
 0x13a   :  { %618 = vmatpush1.msra.mxu0 %v2523_v23  ;;  %2027 = vmatpush3.msra.mxu1 %v2603_v46 }
 0x13b   :  { %619 = vmatprep.subr.mxu0 %v2527_v24  ;;  %2028 = vmatprep.subr.mxu1 %v3395_v53 }
 0x13c   :  { %620 = vmatpush1.msra.mxu0 %v2533_v26  ;;  %2029 = vmatpush3.msra.mxu1 %v2608_v47 }
 0x13d   :  { %621 = vmatprep.subr.mxu0 %v2536_v27  ;;  %2030 = vmatprep.subr.mxu1 %v3395_v53 }
 0x13e   :  { %622 = vmatpush1.msra.mxu0 %v2542_v29  ;;  %2031 = vmatpush3.msra.mxu1 %v2615_v48 }
 0x13f   :  { %623 = vmatprep.subr.mxu0 %v2546_v30  ;;  %2032 = vmatprep.subr.mxu1 %v3395_v53 }
 0x140   :  { %624 = vmatpush1.msra.mxu0 %v2552_v32  ;;  %2033 = vmatpush3.msra.mxu1 %v2621_v49 }
 0x141   :  { %625 = vmatprep.subr.mxu0 %v2556_v33  ;;  %2034 = vmatprep.subr.mxu1 %v3395_v53 }
 0x142   :  { %626 = vmatpush1.msra.mxu0 %v2562_v35  ;;  %2035 = vmatpush3.msra.mxu1 %v2627_v50 }
 0x143   :  { %627 = vmatprep.subr.mxu0 %v2566_v36  ;;  %2036 = vmatprep.subr.mxu1 %v3395_v53 }
 0x144   :  { %628 = vmatpush1.msra.mxu0 %v2572_v38  ;;  %2037 = vmatpush3.msra.mxu1 %v2633_v51 }
 0x145   :  { %629 = vmatprep.subr.mxu0 %v2576_v39  ;;  %2038 = vmatprep.subr.mxu1 %v3395_v53 }
 0x146   :  { %630 = vmatpush1.msra.mxu0 %v2582_v41  ;;  %2039 = vmatpush3.msra.mxu1 %v3396_v14 }
 0x147   :  { %631 = vmatprep.subr.mxu0 %v3397_v57  ;;  %2040 = vmatprep.subr.mxu1 %v3395_v53 }
 0x148   :  { %632 = vmatpush1.msra.mxu0 %v3398_v60  ;;  %665 = vmatprep.mubr.f32.mxu0 %v3395_v53 }
 0x149   :  { %2041 = vmatpush3.msra.mxu1 %v3399_v58  ;;  %2042 = vmatprep.mubr.msk.f32.mxu1 %vm2438_vm1, %v3395_v53 }
 0x14a   :  { %778 = vmatprep.subr.mxu0 %v3400_v44  ;;  %2045 = vmatprep.subr.mxu1 %v3395_v53 }
 0x1e9   :  { %v489_v54 = vpop.f32.mrf.mxu0  ;;  %v560_v42 = vpop.f32.mrf.mxu1 }
 0x1ea   :  { %v565_v11 = vrot.slane %v489_v54, 6  ;;  %v584_v57 = vadd.f32 %v560_v42, %v2721_v62  ;;  %v3407_v42 = vld [vmem:[#allocation8_spill] sm:$0xff] }
 0x1eb   :  { %v491_v55 = vpop.f32.mrf.mxu0  ;;  %v2009_v56 = vpop.f32.mrf.mxu1 }
 0x1ec   :  { %v567_v59 = vadd.f32 %v565_v11, %v2715_v0  ;;  %v575_v1 = vrot.slane %v491_v55, 6  ;;  %v586_v41 = vrot.slane %v584_v57, 6  ;;  %v594_v56 = vrot.slane %v2727_v16, 6  ;;  %v3403_v16 = vld [vmem:[#allocation13_spill] sm:$0xff]  ;;  %v3405_v57 = vld [vmem:[#allocation12_spill] sm:$0xff] }
 0x1ee   :  { %v1764_v63 = vmul.f32 -1.442695, %v567_v59  ;;  %v577_v19 = vadd.f32 %v575_v1, %v2718_v52 }
 0x1f0   :  { %2271 = vpow2.f32 %v1764_v63  ;;  %v1765_v12 = vmul.f32 -1.442695, %v577_v19 }
 0x1f2   :  { %2273 = vpow2.f32 %v1765_v12 }
 0x1fd   :  { %v2272_v58 = vpop.eup %2271 }
 0x1fe   :  { %v571_v60 = vadd.f32 1.0, %v2272_v58 }
 0x1ff   :  { %v2274_v44 = vpop.eup %2273 }
 0x200   :  { %2275 = vrcp.f32 %v571_v60  ;;  %v581_v14 = vadd.f32 1.0, %v2274_v44  ;;  %v3406_v44 = vld [vmem:[#allocation14_spill] sm:$0xff] }
 0x202   :  { %2277 = vrcp.f32 %v581_v14  ;;  %v3404_v14 = vld [vmem:[#allocation11_spill] sm:$0xff] }
 0x20d   :  { %v2276_v54 = vpop.eup %2275 }
 0x20e   :  { %v588_v39 = vmul.f32 %v2276_v54, %v586_v41  ;;  %v3402_v41 = vld [vmem:[#allocation10_spill] sm:$0xff] }
 0x20f   :  { %v2278_v55 = vpop.eup %2277 }
 0x210   :  { %v589_v11 = vadd.f32 %v588_v39, %v2724_v61  ;;  %v591_v59 = vsub.f32 1.0, %v2278_v55  ;;  %v596_v63 = vmul.f32 %v2278_v55, %v594_v56  ;;  %v3401_v39 = vld [vmem:[#allocation9_spill] sm:$0xff] }
 0x212   :  { %2279 = vtanh.f32 %v589_v11 }
 0x21f   :  { %v2280_v19 = vpop.eup %2279 }
 0x220   :  { %v592_v12 = vmul.f32 %v2280_v19, %v591_v59 }
 0x222   :  { %v2803_v58 = vadd.f32 %v596_v63, %v592_v12 }
 0x224   :  { %v599_v60 = vrot.slane %v2803_v58, 2 }
 0x226   :  { %666 = vmatmul.mubr.f32.vlgmr.msra.gmra.mxu0 %v599_v60  ;;  %2043 = vmatmul.mubr.f32.vlgmr.msra.gmra.mxu1 %v599_v60 }
 0x227   :  { %779 = vmatpush1.msra.mxu0 %v2467_v2  ;;  %2046 = vmatpush3.msra.mxu1 %v2530_v25 }
 0x228   :  { %780 = vmatprep.subr.mxu0 %v2469_v3  ;;  %2047 = vmatprep.subr.mxu1 %v3395_v53 }
 0x229   :  { %781 = vmatpush1.msra.mxu0 %v2472_v4  ;;  %2048 = vmatpush3.msra.mxu1 %v2539_v28 }
 0x22a   :  { %782 = vmatprep.subr.mxu0 %v2475_v5  ;;  %2049 = vmatprep.subr.mxu1 %v3395_v53 }
 0x22b   :  { %783 = vmatpush1.msra.mxu0 %v2478_v6  ;;  %2050 = vmatpush3.msra.mxu1 %v2549_v31 }
 0x22c   :  { %784 = vmatprep.subr.mxu0 %v2481_v7  ;;  %2051 = vmatprep.subr.mxu1 %v3395_v53 }
 0x22d   :  { %785 = vmatpush1.msra.mxu0 %v2484_v8  ;;  %2052 = vmatpush3.msra.mxu1 %v2559_v34 }
 0x22e   :  { %786 = vmatprep.subr.mxu0 %v2487_v9  ;;  %2053 = vmatprep.subr.mxu1 %v3395_v53 }
 0x22f   :  { %787 = vmatpush1.msra.mxu0 %v2490_v10  ;;  %2054 = vmatpush3.msra.mxu1 %v2569_v37 }
 0x230   :  { %788 = vmatprep.subr.mxu0 %v2493_v13  ;;  %2055 = vmatprep.subr.mxu1 %v3395_v53 }
 0x231   :  { %789 = vmatpush1.msra.mxu0 %v2499_v15  ;;  %2056 = vmatpush3.msra.mxu1 %v2579_v40 }
 0x232   :  { %790 = vmatprep.subr.mxu0 %v2502_v17  ;;  %2057 = vmatprep.subr.mxu1 %v3395_v53 }
 0x233   :  { %791 = vmatpush1.msra.mxu0 %v2506_v18  ;;  %2058 = vmatpush3.msra.mxu1 %v2589_v43 }
 0x234   :  { %792 = vmatprep.subr.mxu0 %v2512_v20  ;;  %2059 = vmatprep.subr.mxu1 %v3395_v53 }
 0x235   :  { %793 = vmatpush1.msra.mxu0 %v2515_v21  ;;  %2060 = vmatpush3.msra.mxu1 %v2597_v45 }
 0x236   :  { %794 = vmatprep.subr.mxu0 %v2519_v22  ;;  %2061 = vmatprep.subr.mxu1 %v3395_v53 }
 0x237   :  { %795 = vmatpush1.msra.mxu0 %v2523_v23  ;;  %2062 = vmatpush3.msra.mxu1 %v2603_v46 }
 0x238   :  { %796 = vmatprep.subr.mxu0 %v2527_v24  ;;  %2063 = vmatprep.subr.mxu1 %v3395_v53 }
 0x239   :  { %797 = vmatpush1.msra.mxu0 %v2533_v26  ;;  %2064 = vmatpush3.msra.mxu1 %v2608_v47 }
 0x23a   :  { %798 = vmatprep.subr.mxu0 %v2536_v27  ;;  %2065 = vmatprep.subr.mxu1 %v3395_v53 }
 0x23b   :  { %799 = vmatpush1.msra.mxu0 %v2542_v29  ;;  %2066 = vmatpush3.msra.mxu1 %v2615_v48 }
 0x23c   :  { %800 = vmatprep.subr.mxu0 %v2546_v30  ;;  %2067 = vmatprep.subr.mxu1 %v3395_v53 }
 0x23d   :  { %801 = vmatpush1.msra.mxu0 %v2552_v32  ;;  %2068 = vmatpush3.msra.mxu1 %v2621_v49 }
 0x23e   :  { %802 = vmatprep.subr.mxu0 %v2556_v33  ;;  %2069 = vmatprep.subr.mxu1 %v3395_v53 }
 0x23f   :  { %803 = vmatpush1.msra.mxu0 %v2562_v35  ;;  %2070 = vmatpush3.msra.mxu1 %v2627_v50 }
 0x240   :  { %804 = vmatprep.subr.mxu0 %v2566_v36  ;;  %2071 = vmatprep.subr.mxu1 %v3395_v53 }
 0x241   :  { %805 = vmatpush1.msra.mxu0 %v2572_v38  ;;  %2072 = vmatpush3.msra.mxu1 %v2633_v51 }
 0x242   :  { %806 = vmatprep.subr.mxu0 %v3401_v39  ;;  %2073 = vmatprep.subr.mxu1 %v3395_v53 }
 0x243   :  { %807 = vmatpush1.msra.mxu0 %v3402_v41  ;;  %2074 = vmatpush3.msra.mxu1 %v3403_v16 }
 0x244   :  { %808 = vmatprep.subr.mxu0 %v3404_v14  ;;  %2075 = vmatprep.subr.mxu1 %v3395_v53 }
 0x245   :  { %809 = vmatpush1.msra.mxu0 %v3405_v57  ;;  %842 = vmatprep.mubr.f32.mxu0 %v3395_v53 }
 0x246   :  { %2076 = vmatpush3.msra.mxu1 %v3406_v44  ;;  %2077 = vmatprep.mubr.msk.f32.mxu1 %vm2438_vm1, %v3395_v53 }
 0x247   :  { %955 = vmatprep.subr.mxu0 %v3407_v42  ;;  %2080 = vmatprep.subr.mxu1 %v3395_v53 }
 0x2e6   :  { %v667_v1 = vpop.f32.mrf.mxu0  ;;  %v738_v54 = vpop.f32.mrf.mxu1 }
 0x2e7   :  { %v743_v11 = vrot.slane %v667_v1, 4  ;;  %v762_v14 = vadd.f32 %v738_v54, %v2721_v62  ;;  %v2959_v54 = vld [vmem:[#allocation2 + $0x180] sm:$0xff] }
 0x2e8   :  { %v669_v55 = vpop.f32.mrf.mxu0  ;;  %v2044_v56 = vpop.f32.mrf.mxu1 }
 0x2e9   :  { %v745_v59 = vadd.f32 %v743_v11, %v2715_v0  ;;  %v753_v12 = vrot.slane %v669_v55, 4  ;;  %v764_v41 = vrot.slane %v762_v14, 4  ;;  %v771_v56 = vrot.slane %v2803_v58, 6 }
 0x2eb   :  { %v1766_v19 = vmul.f32 -1.442695, %v745_v59  ;;  %v755_v63 = vadd.f32 %v753_v12, %v2718_v52 }
 0x2ed   :  { %2281 = vpow2.f32 %v1766_v19  ;;  %v1767_v60 = vmul.f32 -1.442695, %v755_v63 }
 0x2ef   :  { %2283 = vpow2.f32 %v1767_v60  ;;  %v2967_v60 = vld [vmem:[#allocation2 + $0x168] sm:$0xff] }
 0x2fa   :  { %v2282_v44 = vpop.eup %2281 }
 0x2fb   :  { %v749_v57 = vadd.f32 1.0, %v2282_v44 }
 0x2fc   :  { %v2284_v42 = vpop.eup %2283 }
 0x2fd   :  { %2285 = vrcp.f32 %v749_v57  ;;  %v759_v16 = vadd.f32 1.0, %v2284_v42  ;;  %v2971_v42 = vld [vmem:[#allocation2 + $0x158] sm:$0xff] }
 0x2ff   :  { %2287 = vrcp.f32 %v759_v16 }
 0x30a   :  { %v2286_v1 = vpop.eup %2285 }
 0x30b   :  { %v766_v39 = vmul.f32 %v2286_v1, %v764_v41  ;;  %v2975_v1 = vld [vmem:[#allocation2 + $0x150] sm:$0xff] }
 0x30c   :  { %v2288_v55 = vpop.eup %2287 }
 0x30d   :  { %v767_v11 = vadd.f32 %v766_v39, %v2724_v61  ;;  %v769_v59 = vsub.f32 1.0, %v2288_v55  ;;  %v773_v63 = vmul.f32 %v2288_v55, %v771_v56  ;;  %v2991_v55 = vld [vmem:[#allocation2 + $0x120] sm:$0xff]  ;;  %v2999_v56 = vld [vmem:[#allocation2 + $0x108] sm:$0xff] }
 0x30f   :  { %2289 = vtanh.f32 %v767_v11  ;;  %v2983_v11 = vld [vmem:[#allocation2 + $0x138] sm:$0xff] }
 0x31c   :  { %v2290_v19 = vpop.eup %2289 }
 0x31d   :  { %v770_v12 = vmul.f32 %v2290_v19, %v769_v59  ;;  %v3007_v59 = vld [vmem:[#allocation2 + $0xf0] sm:$0xff]  ;;  %v3015_v19 = vld [vmem:[#allocation2 + $0xd8] sm:$0xff] }
 0x31f   :  { %v2878_v44 = vadd.f32 %v773_v63, %v770_v12  ;;  %v3023_v12 = vld [vmem:[#allocation2 + $0xc0] sm:$0xff]  ;;  %v3031_v63 = vld [vmem:[#allocation2 + $0xa8] sm:$0xff] }
 0x321   :  { %v776_v57 = vrot.slane %v2878_v44, 4 }
 0x323   :  { %843 = vmatmul.mubr.f32.vlgmr.msra.gmra.mxu0 %v776_v57  ;;  %2078 = vmatmul.mubr.f32.vlgmr.msra.gmra.mxu1 %v776_v57  ;;  %v3047_v57 = vld [vmem:[#allocation2 + $0x78] sm:$0xff] }
 0x324   :  { %956 = vmatpush1.msra.mxu0 %v2467_v2  ;;  %2081 = vmatpush3.msra.mxu1 %v2530_v25  ;;  %v3408_v2 = vld [vmem:[#allocation9_spill] sm:$0xff] }
 0x325   :  { %957 = vmatprep.subr.mxu0 %v2469_v3  ;;  %2082 = vmatprep.subr.mxu1 %v3395_v53  ;;  %v3409_v3 = vld [vmem:[#allocation10_spill] sm:$0xff] }
 0x326   :  { %958 = vmatpush1.msra.mxu0 %v2472_v4  ;;  %2083 = vmatpush3.msra.mxu1 %v2539_v28  ;;  %v3410_v4 = vld [vmem:[#allocation13_spill] sm:$0xff] }
 0x327   :  { %959 = vmatprep.subr.mxu0 %v2475_v5  ;;  %2084 = vmatprep.subr.mxu1 %v3395_v53  ;;  %v3411_v5 = vld [vmem:[#allocation11_spill] sm:$0xff] }
 0x328   :  { %960 = vmatpush1.msra.mxu0 %v2478_v6  ;;  %2085 = vmatpush3.msra.mxu1 %v2549_v31  ;;  %v3412_v6 = vld [vmem:[#allocation12_spill] sm:$0xff] }
 0x329   :  { %961 = vmatprep.subr.mxu0 %v2481_v7  ;;  %2086 = vmatprep.subr.mxu1 %v3395_v53  ;;  %v3413_v7 = vld [vmem:[#allocation14_spill] sm:$0xff] }
 0x32a   :  { %962 = vmatpush1.msra.mxu0 %v2484_v8  ;;  %2087 = vmatpush3.msra.mxu1 %v2559_v34  ;;  %v2946_v8 = vld [vmem:[#allocation2 + $0x188] sm:$0xff] }
 0x32b   :  { %963 = vmatprep.subr.mxu0 %v2487_v9  ;;  %2088 = vmatprep.subr.mxu1 %v3395_v53 }
 0x32c   :  { %964 = vmatpush1.msra.mxu0 %v2490_v10  ;;  %2089 = vmatpush3.msra.mxu1 %v2569_v37 }
 0x32d   :  { %965 = vmatprep.subr.mxu0 %v2493_v13  ;;  %2090 = vmatprep.subr.mxu1 %v3395_v53 }
 0x32e   :  { %966 = vmatpush1.msra.mxu0 %v2499_v15  ;;  %2091 = vmatpush3.msra.mxu1 %v2579_v40 }
 0x32f   :  { %967 = vmatprep.subr.mxu0 %v2502_v17  ;;  %2092 = vmatprep.subr.mxu1 %v3395_v53 }
 0x330   :  { %968 = vmatpush1.msra.mxu0 %v2506_v18  ;;  %2093 = vmatpush3.msra.mxu1 %v2589_v43 }
 0x331   :  { %969 = vmatprep.subr.mxu0 %v2512_v20  ;;  %2094 = vmatprep.subr.mxu1 %v3395_v53 }
 0x332   :  { %970 = vmatpush1.msra.mxu0 %v2515_v21  ;;  %2095 = vmatpush3.msra.mxu1 %v2597_v45 }
 0x333   :  { %971 = vmatprep.subr.mxu0 %v2519_v22  ;;  %2096 = vmatprep.subr.mxu1 %v3395_v53 }
 0x334   :  { %972 = vmatpush1.msra.mxu0 %v2523_v23  ;;  %2097 = vmatpush3.msra.mxu1 %v2603_v46 }
 0x335   :  { %973 = vmatprep.subr.mxu0 %v2527_v24  ;;  %2098 = vmatprep.subr.mxu1 %v3395_v53 }
 0x336   :  { %974 = vmatpush1.msra.mxu0 %v2533_v26  ;;  %2099 = vmatpush3.msra.mxu1 %v2608_v47 }
 0x337   :  { %975 = vmatprep.subr.mxu0 %v2536_v27  ;;  %2100 = vmatprep.subr.mxu1 %v3395_v53 }
 0x338   :  { %976 = vmatpush1.msra.mxu0 %v2542_v29  ;;  %2101 = vmatpush3.msra.mxu1 %v2615_v48 }
 0x339   :  { %977 = vmatprep.subr.mxu0 %v2546_v30  ;;  %2102 = vmatprep.subr.mxu1 %v3395_v53 }
 0x33a   :  { %978 = vmatpush1.msra.mxu0 %v2552_v32  ;;  %2103 = vmatpush3.msra.mxu1 %v2621_v49 }
 0x33b   :  { %979 = vmatprep.subr.mxu0 %v2556_v33  ;;  %2104 = vmatprep.subr.mxu1 %v3395_v53 }
 0x33c   :  { %980 = vmatpush1.msra.mxu0 %v2562_v35  ;;  %2105 = vmatpush3.msra.mxu1 %v2627_v50 }
 0x33d   :  { %981 = vmatprep.subr.mxu0 %v2566_v36  ;;  %2106 = vmatprep.subr.mxu1 %v3395_v53 }
 0x33e   :  { %982 = vmatpush1.msra.mxu0 %v2572_v38  ;;  %2107 = vmatpush3.msra.mxu1 %v2633_v51  ;;  %v948_v38 = vrot.slane %v2878_v44, 6  ;;  %v3039_v44 = vld [vmem:[#allocation2 + $0x90] sm:$0xff] }
 0x33f   :  { %983 = vmatprep.subr.mxu0 %v3408_v2  ;;  %2108 = vmatprep.subr.mxu1 %v3395_v53  ;;  %v3055_v2 = vld [vmem:[#allocation2 + $0x60] sm:$0xff] }
 0x340   :  { %984 = vmatpush1.msra.mxu0 %v3409_v3  ;;  %2109 = vmatpush3.msra.mxu1 %v3410_v4  ;;  %v3063_v3 = vld [vmem:[#allocation2 + $0x48] sm:$0xff] }
 0x341   :  { %985 = vmatprep.subr.mxu0 %v3411_v5  ;;  %2110 = vmatprep.subr.mxu1 %v3395_v53  ;;  %v3071_v5 = vld [vmem:[#allocation2 + $0x30] sm:$0xff] }
 0x342   :  { %986 = vmatpush1.msra.mxu0 %v3412_v6  ;;  %1019 = vmatprep.mubr.f32.mxu0 %v3395_v53  ;;  %3415 = vst [vmem:[#allocation9_spill] sm:$0xff] %v3071_v5  ;;  %v3079_v6 = vld [vmem:[#allocation2 + $0x18] sm:$0xff] }
 0x343   :  { %2111 = vmatpush3.msra.mxu1 %v3413_v7  ;;  %2112 = vmatprep.mubr.msk.f32.mxu1 %vm2438_vm1, %v3395_v53  ;;  %3417 = vst [vmem:[#allocation13_spill] sm:$0xff] %v3079_v6 }
 0x344   :  { %1118 = vmatprep.subr.mxu0 %v2946_v8  ;;  %2115 = vmatprep.subr.mxu1 %v3395_v53 }
 0x3e3   :  { %v844_v9 = vpop.f32.mrf.mxu0  ;;  %v915_v10 = vpop.f32.mrf.mxu1 }
 0x3e4   :  { %v920_v13 = vrot.slane %v844_v9, 2  ;;  %v939_v29 = vadd.f32 %v915_v10, %v2721_v62  ;;  %v3418_v9 = vld [vmem:[#allocation15_spill] sm:$0xff] }
 0x3e5   :  { %v846_v15 = vpop.f32.mrf.mxu0  ;;  %v2079_v17 = vpop.f32.mrf.mxu1 }
 0x3e6   :  { %v922_v18 = vadd.f32 %v920_v13, %v2715_v0  ;;  %v930_v21 = vrot.slane %v846_v15, 2  ;;  %v941_v32 = vrot.slane %v939_v29, 2 }
 0x3e8   :  { %v1768_v20 = vmul.f32 -1.442695, %v922_v18  ;;  %v932_v22 = vadd.f32 %v930_v21, %v2718_v52  ;;  %v3419_v18 = vld [vmem:[#allocation16_spill] sm:$0xff] }
 0x3ea   :  { %2291 = vpow2.f32 %v1768_v20  ;;  %v1769_v23 = vmul.f32 -1.442695, %v932_v22 }
 0x3ec   :  { %2293 = vpow2.f32 %v1769_v23 }
 0x3f7   :  { %v2292_v24 = vpop.eup %2291 }
 0x3f8   :  { %v926_v26 = vadd.f32 1.0, %v2292_v24 }
 0x3f9   :  { %v2294_v27 = vpop.eup %2293 }
 0x3fa   :  { %2295 = vrcp.f32 %v926_v26  ;;  %v936_v30 = vadd.f32 1.0, %v2294_v27 }
 0x3fc   :  { %2297 = vrcp.f32 %v936_v30  ;;  %v3420_v30 = vld [vmem:[#allocation17_spill] sm:$0xff] }
 0x407   :  { %v2296_v33 = vpop.eup %2295 }
 0x408   :  { %v943_v35 = vmul.f32 %v2296_v33, %v941_v32 }
 0x409   :  { %v2298_v36 = vpop.eup %2297 }
 0x40a   :  { %v944_v0 = vadd.f32 %v943_v35, %v2724_v61  ;;  %v946_v52 = vsub.f32 1.0, %v2298_v36  ;;  %v950_v41 = vmul.f32 %v2298_v36, %v948_v38  ;;  %v2963_v61 = vld [vmem:[#allocation2 + $0x170] sm:$0xff] }
 0x40c   :  { %2299 = vtanh.f32 %v944_v0 }
 0x419   :  { %v2300_v58 = vpop.eup %2299 }
 0x41a   :  { %v947_v39 = vmul.f32 %v2300_v58, %v946_v52  ;;  %v3098_v58 = vld [vmem:[#allocation2 + $0x190] sm:$0xff] }
 0x41c   :  { %v951_v16 = vadd.f32 %v950_v41, %v947_v39  ;;  %v3104_v39 = vld [vmem:[#allocation2 + $0x178] sm:$0xff]  ;;  %v3110_v41 = vld [vmem:[#allocation2 + $0x160] sm:$0xff] }
 0x41e   :  { %v2955_v14 = vrot.slane %v951_v16, 6  ;;  %v3116_v16 = vld [vmem:[#allocation2 + $0x148] sm:$0xff] }
 0x420   :  { %1020 = vmatmul.mubr.f32.vlgmr.msra.gmra.mxu0 %v2955_v14  ;;  %2113 = vmatmul.mubr.f32.vlgmr.msra.gmra.mxu1 %v2955_v14 }
 0x421   :  { %1119 = vmatpush1.msra.mxu0 %v2959_v54  ;;  %2116 = vmatpush3.msra.mxu1 %v2530_v25  ;;  %v2979_v25 = vld [vmem:[#allocation2 + $0x140] sm:$0xff] }
 0x422   :  { %1120 = vmatprep.subr.mxu0 %v2963_v61  ;;  %2117 = vmatprep.subr.mxu1 %v3395_v53 }
 0x423   :  { %1121 = vmatpush1.msra.mxu0 %v2967_v60  ;;  %2118 = vmatpush3.msra.mxu1 %v2539_v28  ;;  %v2987_v28 = vld [vmem:[#allocation2 + $0x128] sm:$0xff] }
 0x424   :  { %1122 = vmatprep.subr.mxu0 %v2971_v42  ;;  %2119 = vmatprep.subr.mxu1 %v3395_v53 }
 0x425   :  { %1123 = vmatpush1.msra.mxu0 %v2975_v1  ;;  %2120 = vmatpush3.msra.mxu1 %v2549_v31  ;;  %v2995_v31 = vld [vmem:[#allocation2 + $0x110] sm:$0xff] }
 0x426   :  { %1124 = vmatprep.subr.mxu0 %v2979_v25  ;;  %2121 = vmatprep.subr.mxu1 %v3395_v53 }
 0x427   :  { %1125 = vmatpush1.msra.mxu0 %v2983_v11  ;;  %2122 = vmatpush3.msra.mxu1 %v2559_v34  ;;  %v3003_v34 = vld [vmem:[#allocation2 + $0xf8] sm:$0xff] }
 0x428   :  { %1126 = vmatprep.subr.mxu0 %v2987_v28  ;;  %2123 = vmatprep.subr.mxu1 %v3395_v53 }
 0x429   :  { %1127 = vmatpush1.msra.mxu0 %v2991_v55  ;;  %2124 = vmatpush3.msra.mxu1 %v2569_v37  ;;  %v3011_v37 = vld [vmem:[#allocation2 + $0xe0] sm:$0xff] }
 0x42a   :  { %1128 = vmatprep.subr.mxu0 %v2995_v31  ;;  %2125 = vmatprep.subr.mxu1 %v3395_v53 }
 0x42b   :  { %1129 = vmatpush1.msra.mxu0 %v2999_v56  ;;  %2126 = vmatpush3.msra.mxu1 %v2579_v40  ;;  %v3019_v40 = vld [vmem:[#allocation2 + $0xc8] sm:$0xff] }
 0x42c   :  { %1130 = vmatprep.subr.mxu0 %v3003_v34  ;;  %2127 = vmatprep.subr.mxu1 %v3395_v53 }
 0x42d   :  { %1131 = vmatpush1.msra.mxu0 %v3007_v59  ;;  %2128 = vmatpush3.msra.mxu1 %v2589_v43  ;;  %v3027_v43 = vld [vmem:[#allocation2 + $0xb0] sm:$0xff] }
 0x42e   :  { %1132 = vmatprep.subr.mxu0 %v3011_v37  ;;  %2129 = vmatprep.subr.mxu1 %v3395_v53 }
 0x42f   :  { %1133 = vmatpush1.msra.mxu0 %v3015_v19  ;;  %2130 = vmatpush3.msra.mxu1 %v2597_v45  ;;  %v3035_v45 = vld [vmem:[#allocation2 + $0x98] sm:$0xff] }
 0x430   :  { %1134 = vmatprep.subr.mxu0 %v3019_v40  ;;  %2131 = vmatprep.subr.mxu1 %v3395_v53 }
 0x431   :  { %1135 = vmatpush1.msra.mxu0 %v3023_v12  ;;  %2132 = vmatpush3.msra.mxu1 %v2603_v46  ;;  %v3043_v46 = vld [vmem:[#allocation2 + $0x80] sm:$0xff] }
 0x432   :  { %1136 = vmatprep.subr.mxu0 %v3027_v43  ;;  %2133 = vmatprep.subr.mxu1 %v3395_v53 }
 0x433   :  { %1137 = vmatpush1.msra.mxu0 %v3031_v63  ;;  %2134 = vmatpush3.msra.mxu1 %v2608_v47  ;;  %v3051_v47 = vld [vmem:[#allocation2 + $0x68] sm:$0xff] }
 0x434   :  { %1138 = vmatprep.subr.mxu0 %v3035_v45  ;;  %2135 = vmatprep.subr.mxu1 %v3395_v53 }
 0x435   :  { %1139 = vmatpush1.msra.mxu0 %v3039_v44  ;;  %2136 = vmatpush3.msra.mxu1 %v2615_v48  ;;  %v3059_v48 = vld [vmem:[#allocation2 + $0x50] sm:$0xff] }
 0x436   :  { %1140 = vmatprep.subr.mxu0 %v3043_v46  ;;  %2137 = vmatprep.subr.mxu1 %v3395_v53 }
 0x437   :  { %1141 = vmatpush1.msra.mxu0 %v3047_v57  ;;  %2138 = vmatpush3.msra.mxu1 %v2621_v49  ;;  %v3067_v49 = vld [vmem:[#allocation2 + $0x38] sm:$0xff] }
 0x438   :  { %1142 = vmatprep.subr.mxu0 %v3051_v47  ;;  %2139 = vmatprep.subr.mxu1 %v3395_v53  ;;  %3414 = vst [vmem:[#allocation8_spill] sm:$0xff] %v3067_v49 }
 0x439   :  { %1143 = vmatpush1.msra.mxu0 %v3055_v2  ;;  %2140 = vmatpush3.msra.mxu1 %v2627_v50  ;;  %v3075_v50 = vld [vmem:[#allocation2 + $0x20] sm:$0xff] }
 0x43a   :  { %1144 = vmatprep.subr.mxu0 %v3059_v48  ;;  %2141 = vmatprep.subr.mxu1 %v3395_v53  ;;  %3416 = vst [vmem:[#allocation10_spill] sm:$0xff] %v3075_v50 }
 0x43b   :  { %1145 = vmatpush1.msra.mxu0 %v3063_v3  ;;  %2142 = vmatpush3.msra.mxu1 %v2633_v51 }
 0x43c   :  { %1146 = vmatprep.subr.mxu0 %v3067_v49  ;;  %2143 = vmatprep.subr.mxu1 %v3395_v53 }
 0x43d   :  { %1147 = vmatpush1.msra.mxu0 %v3071_v5  ;;  %2144 = vmatpush3.msra.mxu1 %v3410_v4 }
 0x43e   :  { %1148 = vmatprep.subr.mxu0 %v3075_v50  ;;  %2145 = vmatprep.subr.mxu1 %v3395_v53 }
 0x43f   :  { %1149 = vmatpush1.msra.mxu0 %v3079_v6  ;;  %1182 = vmatprep.mubr.f32.mxu0 %v3395_v53 }
 0x440   :  { %2146 = vmatpush3.msra.mxu1 %v3413_v7  ;;  %2147 = vmatprep.mubr.msk.f32.mxu1 %vm2438_vm1, %v3395_v53 }
 0x441   :  { %1296 = vmatprep.subr.mxu0 %v2946_v8  ;;  %2150 = vmatprep.subr.mxu1 %v3395_v53 }
 0x4e0   :  { %v1021_v51 = vpop.f32.mrf.mxu0  ;;  %v1092_v4 = vpop.f32.mrf.mxu1 }
 0x4e1   :  { %v1096_v10 = vadd.f32 %v1021_v51, %v3418_v9  ;;  %v1110_v26 = vadd.f32 %v1092_v4, %v2721_v62  ;;  %v3128_v51 = vld [vmem:[#allocation2 + $0x118] sm:$0xff]  ;;  %v3134_v4 = vld [vmem:[#allocation2 + $0x100] sm:$0xff] }
 0x4e2   :  { %v2114_v13 = vpop.f32.mrf.mxu1  ;;  %v1023_v17 = vpop.f32.mrf.mxu0 }
 0x4e3   :  { %v1770_v15 = vmul.f32 -1.442695, %v1096_v10  ;;  %v1103_v20 = vadd.f32 %v1023_v17, %v3419_v18  ;;  %v3140_v10 = vld [vmem:[#allocation2 + $0xe8] sm:$0xff]  ;;  %v3146_v13 = vld [vmem:[#allocation2 + $0xd0] sm:$0xff]  ;;  %v3158_v17 = vld [vmem:[#allocation2 + $0xa0] sm:$0xff] }
 0x4e5   :  { %2301 = vpow2.f32 %v1770_v15  ;;  %v1771_v21 = vmul.f32 -1.442695, %v1103_v20  ;;  %v3152_v15 = vld [vmem:[#allocation2 + $0xb8] sm:$0xff]  ;;  %v3164_v20 = vld [vmem:[#allocation2 + $0x88] sm:$0xff] }
 0x4e7   :  { %2303 = vpow2.f32 %v1771_v21  ;;  %v3170_v21 = vld [vmem:[#allocation2 + $0x70] sm:$0xff] }
 0x4f2   :  { %v2302_v7 = vpop.eup %2301 }
 0x4f3   :  { %v1100_v22 = vadd.f32 1.0, %v2302_v7  ;;  %v3176_v7 = vld [vmem:[#allocation2 + $0x58] sm:$0xff] }
 0x4f4   :  { %v2304_v23 = vpop.eup %2303 }
 0x4f5   :  { %2305 = vrcp.f32 %v1100_v22  ;;  %v1107_v24 = vadd.f32 1.0, %v2304_v23  ;;  %v3182_v22 = vld [vmem:[#allocation2 + $0x40] sm:$0xff]  ;;  %v3189_v23 = vld [vmem:[#allocation2 + $0x28] sm:$0xff] }
 0x4f6   :  { %3421 = vst [vmem:[#allocation11_spill] sm:$0xff] %v3182_v22  ;;  %3422 = vst [vmem:[#allocation12_spill] sm:$0xff] %v3189_v23 }
 0x4f7   :  { %2307 = vrcp.f32 %v1107_v24 }
 0x502   :  { %v2306_v27 = vpop.eup %2305 }
 0x503   :  { %v1111_v29 = vmul.f32 %v2306_v27, %v1110_v26 }
 0x504   :  { %v2308_v33 = vpop.eup %2307 }
 0x505   :  { %v1112_v32 = vadd.f32 %v1111_v29, %v3420_v30  ;;  %v1114_v35 = vsub.f32 1.0, %v2308_v33  ;;  %v1116_v38 = vmul.f32 %v2308_v33, %v2955_v14  ;;  %v3122_v14 = vld [vmem:[#allocation2 + $0x130] sm:$0xff] }
 0x507   :  { %2309 = vtanh.f32 %v1112_v32 }
 0x514   :  { %v2310_v0 = vpop.eup %2309 }
 0x515   :  { %v1115_v36 = vmul.f32 %v2310_v0, %v1114_v35 }
 0x517   :  { %v3093_v52 = vadd.f32 %v1116_v38, %v1115_v36 }
 0x519   :  { %1183 = vmatmul.mubr.f32.vlgmr.msra.gmra.mxu0 %v3093_v52  ;;  %2148 = vmatmul.mubr.f32.vlgmr.msra.gmra.mxu1 %v3093_v52 }
 0x51a   :  { %1297 = vmatpush1.msra.mxu0 %v2959_v54  ;;  %2151 = vmatpush3.msra.mxu1 %v3098_v58 }
 0x51b   :  { %1298 = vmatprep.subr.mxu0 %v2963_v61  ;;  %2152 = vmatprep.subr.mxu1 %v3395_v53 }
 0x51c   :  { %1299 = vmatpush1.msra.mxu0 %v2967_v60  ;;  %2153 = vmatpush3.msra.mxu1 %v3104_v39 }
 0x51d   :  { %1300 = vmatprep.subr.mxu0 %v2971_v42  ;;  %2154 = vmatprep.subr.mxu1 %v3395_v53 }
 0x51e   :  { %1301 = vmatpush1.msra.mxu0 %v2975_v1  ;;  %2155 = vmatpush3.msra.mxu1 %v3110_v41 }
 0x51f   :  { %1302 = vmatprep.subr.mxu0 %v2979_v25  ;;  %2156 = vmatprep.subr.mxu1 %v3395_v53 }
 0x520   :  { %1303 = vmatpush1.msra.mxu0 %v2983_v11  ;;  %2157 = vmatpush3.msra.mxu1 %v3116_v16 }
 0x521   :  { %1304 = vmatprep.subr.mxu0 %v2987_v28  ;;  %2158 = vmatprep.subr.mxu1 %v3395_v53 }
 0x522   :  { %1305 = vmatpush1.msra.mxu0 %v2991_v55  ;;  %2159 = vmatpush3.msra.mxu1 %v3122_v14 }
 0x523   :  { %1306 = vmatprep.subr.mxu0 %v2995_v31  ;;  %2160 = vmatprep.subr.mxu1 %v3395_v53 }
 0x524   :  { %1307 = vmatpush1.msra.mxu0 %v2999_v56  ;;  %2161 = vmatpush3.msra.mxu1 %v3128_v51 }
 0x525   :  { %1308 = vmatprep.subr.mxu0 %v3003_v34  ;;  %2162 = vmatprep.subr.mxu1 %v3395_v53 }
 0x526   :  { %1309 = vmatpush1.msra.mxu0 %v3007_v59  ;;  %2163 = vmatpush3.msra.mxu1 %v3134_v4 }
 0x527   :  { %1310 = vmatprep.subr.mxu0 %v3011_v37  ;;  %2164 = vmatprep.subr.mxu1 %v3395_v53 }
 0x528   :  { %1311 = vmatpush1.msra.mxu0 %v3015_v19  ;;  %2165 = vmatpush3.msra.mxu1 %v3140_v10 }
 0x529   :  { %1312 = vmatprep.subr.mxu0 %v3019_v40  ;;  %2166 = vmatprep.subr.mxu1 %v3395_v53 }
 0x52a   :  { %1313 = vmatpush1.msra.mxu0 %v3023_v12  ;;  %2167 = vmatpush3.msra.mxu1 %v3146_v13 }
 0x52b   :  { %1314 = vmatprep.subr.mxu0 %v3027_v43  ;;  %2168 = vmatprep.subr.mxu1 %v3395_v53 }
 0x52c   :  { %1315 = vmatpush1.msra.mxu0 %v3031_v63  ;;  %2169 = vmatpush3.msra.mxu1 %v3152_v15 }
 0x52d   :  { %1316 = vmatprep.subr.mxu0 %v3035_v45  ;;  %2170 = vmatprep.subr.mxu1 %v3395_v53 }
 0x52e   :  { %1317 = vmatpush1.msra.mxu0 %v3039_v44  ;;  %2171 = vmatpush3.msra.mxu1 %v3158_v17 }
 0x52f   :  { %1318 = vmatprep.subr.mxu0 %v3043_v46  ;;  %2172 = vmatprep.subr.mxu1 %v3395_v53 }
 0x530   :  { %1319 = vmatpush1.msra.mxu0 %v3047_v57  ;;  %2173 = vmatpush3.msra.mxu1 %v3164_v20 }
 0x531   :  { %1320 = vmatprep.subr.mxu0 %v3051_v47  ;;  %2174 = vmatprep.subr.mxu1 %v3395_v53 }
 0x532   :  { %1321 = vmatpush1.msra.mxu0 %v3055_v2  ;;  %2175 = vmatpush3.msra.mxu1 %v3170_v21 }
 0x533   :  { %1322 = vmatprep.subr.mxu0 %v3059_v48  ;;  %2176 = vmatprep.subr.mxu1 %v3395_v53 }
 0x534   :  { %1323 = vmatpush1.msra.mxu0 %v3063_v3  ;;  %2177 = vmatpush3.msra.mxu1 %v3176_v7 }
 0x535   :  { %1324 = vmatprep.subr.mxu0 %v3067_v49  ;;  %2178 = vmatprep.subr.mxu1 %v3395_v53 }
 0x536   :  { %1325 = vmatpush1.msra.mxu0 %v3071_v5  ;;  %2179 = vmatpush3.msra.mxu1 %v3182_v22 }
 0x537   :  { %1326 = vmatprep.subr.mxu0 %v3075_v50  ;;  %2180 = vmatprep.subr.mxu1 %v3395_v53 }
 0x538   :  { %1327 = vmatpush1.msra.mxu0 %v3079_v6  ;;  %1360 = vmatprep.mubr.f32.mxu0 %v3395_v53 }
 0x539   :  { %2181 = vmatpush3.msra.mxu1 %v3189_v23  ;;  %2182 = vmatprep.mubr.msk.f32.mxu1 %vm2438_vm1, %v3395_v53 }
 0x53a   :  { %1473 = vmatprep.subr.mxu0 %v2946_v8  ;;  %2185 = vmatprep.subr.mxu1 %v3395_v53 }
 0x5d9   :  { %v1184_v24 = vpop.f32.mrf.mxu0  ;;  %v1255_v26 = vpop.f32.mrf.mxu1 }
 0x5da   :  { %v1260_v27 = vrot.slane %v1184_v24, 6  ;;  %v1279_v50 = vadd.f32 %v1255_v26, %v2721_v62  ;;  %v3423_v62 = vld [vmem:[#allocation8_spill] sm:$0xff] }
 0x5db   :  { %v1186_v29 = vpop.f32.mrf.mxu0  ;;  %v2149_v32 = vpop.f32.mrf.mxu1  ;;  %v1649_v26 = vld [vmem:[%s3358_s2 + $0x10] sm:$0xff] }
 0x5dc   :  { %v1262_v33 = vadd.f32 %v1260_v27, %v3418_v9  ;;  %v1270_v0 = vrot.slane %v1186_v29, 6  ;;  %v1281_v5 = vrot.slane %v1279_v50, 6  ;;  %v1289_v32 = vrot.slane %v3093_v52, 6 }
 0x5de   :  { %v1772_v35 = vmul.f32 -1.442695, %v1262_v33  ;;  %v1272_v36 = vadd.f32 %v1270_v0, %v3419_v18 }
 0x5e0   :  { %2311 = vpow2.f32 %v1772_v35  ;;  %v1773_v38 = vmul.f32 -1.442695, %v1272_v36 }
 0x5e2   :  { %2313 = vpow2.f32 %v1773_v38  ;;  %v1648_v38 = vld [vmem:[%s3358_s2 + $0x8] sm:$0xff] }
 0x5ed   :  { %v2312_v23 = vpop.eup %2311 }
 0x5ee   :  { %v1266_v6 = vadd.f32 1.0, %v2312_v23 }
 0x5ef   :  { %v2314_v8 = vpop.eup %2313 }
 0x5f0   :  { %2315 = vrcp.f32 %v1266_v6  ;;  %v1276_v22 = vadd.f32 1.0, %v2314_v8  ;;  %v1647_v8 = vld [vmem:[%s3358_s2] sm:$0xff] }
 0x5f2   :  { %2317 = vrcp.f32 %v1276_v22  ;;  %v1650_v22 = vld [vmem:[%s3358_s2 + $0x18] sm:$0xff] }
 0x5fd   :  { %v2316_v24 = vpop.eup %2315 }
 0x5fe   :  { %v1283_v49 = vmul.f32 %v2316_v24, %v1281_v5 }
 0x5ff   :  { %v2318_v29 = vpop.eup %2317 }
 0x600   :  { %v1284_v27 = vadd.f32 %v1283_v49, %v3420_v30  ;;  %v1286_v33 = vsub.f32 1.0, %v2318_v29  ;;  %v1291_v36 = vmul.f32 %v2318_v29, %v1289_v32 }
 0x602   :  { %2319 = vtanh.f32 %v1284_v27 }
 0x60f   :  { %v2320_v35 = vpop.eup %2319 }
 0x610   :  { %v1287_v0 = vmul.f32 %v2320_v35, %v1286_v33 }
 0x612   :  { %v3201_v23 = vadd.f32 %v1291_v36, %v1287_v0 }
 0x614   :  { %v1294_v6 = vrot.slane %v3201_v23, 2 }
 0x616   :  { %1361 = vmatmul.mubr.f32.vlgmr.msra.gmra.mxu0 %v1294_v6  ;;  %2183 = vmatmul.mubr.f32.vlgmr.msra.gmra.mxu1 %v1294_v6 }
 0x617   :  { %1474 = vmatpush1.msra.mxu0 %v2959_v54  ;;  %2186 = vmatpush3.msra.mxu1 %v3098_v58  ;;  %v3424_v54 = vld [vmem:[#allocation9_spill] sm:$0xff] }
 0x618   :  { %1475 = vmatprep.subr.mxu0 %v2963_v61  ;;  %2187 = vmatprep.subr.mxu1 %v3395_v53  ;;  %v3425_v61 = vld [vmem:[#allocation11_spill] sm:$0xff] }
 0x619   :  { %1476 = vmatpush1.msra.mxu0 %v2967_v60  ;;  %2188 = vmatpush3.msra.mxu1 %v3104_v39  ;;  %v3426_v60 = vld [vmem:[#allocation10_spill] sm:$0xff] }
 0x61a   :  { %1477 = vmatprep.subr.mxu0 %v2971_v42  ;;  %2189 = vmatprep.subr.mxu1 %v3395_v53  ;;  %v3427_v42 = vld [vmem:[#allocation13_spill] sm:$0xff] }
 0x61b   :  { %1478 = vmatpush1.msra.mxu0 %v2975_v1  ;;  %2190 = vmatpush3.msra.mxu1 %v3110_v41  ;;  %v3428_v1 = vld [vmem:[#allocation12_spill] sm:$0xff]  ;;  %v1662_v41 = vld [vmem:[%s3358_s2 + $0x78] sm:$0xff] }
 0x61c   :  { %1479 = vmatprep.subr.mxu0 %v2979_v25  ;;  %2191 = vmatprep.subr.mxu1 %v3395_v53 }
 0x61d   :  { %1480 = vmatpush1.msra.mxu0 %v2983_v11  ;;  %2192 = vmatpush3.msra.mxu1 %v3116_v16  ;;  %v1661_v16 = vld [vmem:[%s3358_s2 + $0x70] sm:$0xff] }
 0x61e   :  { %1481 = vmatprep.subr.mxu0 %v2987_v28  ;;  %2193 = vmatprep.subr.mxu1 %v3395_v53 }
 0x61f   :  { %1482 = vmatpush1.msra.mxu0 %v2991_v55  ;;  %2194 = vmatpush3.msra.mxu1 %v3122_v14  ;;  %v1660_v14 = vld [vmem:[%s3358_s2 + $0x68] sm:$0xff] }
 0x620   :  { %1483 = vmatprep.subr.mxu0 %v2995_v31  ;;  %2195 = vmatprep.subr.mxu1 %v3395_v53 }
 0x621   :  { %1484 = vmatpush1.msra.mxu0 %v2999_v56  ;;  %2196 = vmatpush3.msra.mxu1 %v3128_v51  ;;  %v1659_v51 = vld [vmem:[%s3358_s2 + $0x60] sm:$0xff] }
 0x622   :  { %1485 = vmatprep.subr.mxu0 %v3003_v34  ;;  %2197 = vmatprep.subr.mxu1 %v3395_v53 }
 0x623   :  { %1486 = vmatpush1.msra.mxu0 %v3007_v59  ;;  %2198 = vmatpush3.msra.mxu1 %v3134_v4  ;;  %v1658_v4 = vld [vmem:[%s3358_s2 + $0x58] sm:$0xff] }
 0x624   :  { %1487 = vmatprep.subr.mxu0 %v3011_v37  ;;  %2199 = vmatprep.subr.mxu1 %v3395_v53 }
 0x625   :  { %1488 = vmatpush1.msra.mxu0 %v3015_v19  ;;  %2200 = vmatpush3.msra.mxu1 %v3140_v10  ;;  %v1657_v10 = vld [vmem:[%s3358_s2 + $0x50] sm:$0xff] }
 0x626   :  { %1489 = vmatprep.subr.mxu0 %v3019_v40  ;;  %2201 = vmatprep.subr.mxu1 %v3395_v53 }
 0x627   :  { %1490 = vmatpush1.msra.mxu0 %v3023_v12  ;;  %2202 = vmatpush3.msra.mxu1 %v3146_v13  ;;  %v1656_v13 = vld [vmem:[%s3358_s2 + $0x48] sm:$0xff] }
 0x628   :  { %1491 = vmatprep.subr.mxu0 %v3027_v43  ;;  %2203 = vmatprep.subr.mxu1 %v3395_v53 }
 0x629   :  { %1492 = vmatpush1.msra.mxu0 %v3031_v63  ;;  %2204 = vmatpush3.msra.mxu1 %v3152_v15  ;;  %v3272_v63 = vld [vmem:[#allocation2 + $0x1c0] ss:$0 sm:$0xff] }
 0x62a   :  { %1493 = vmatprep.subr.mxu0 %v3035_v45  ;;  %2205 = vmatprep.subr.mxu1 %v3395_v53  ;;  %v1655_v15 = vld [vmem:[%s3358_s2 + $0x40] sm:$0xff] }
 0x62b   :  { %1494 = vmatpush1.msra.mxu0 %v3039_v44  ;;  %2206 = vmatpush3.msra.mxu1 %v3158_v17  ;;  %v1654_v17 = vld [vmem:[%s3358_s2 + $0x38] sm:$0xff] }
 0x62c   :  { %1495 = vmatprep.subr.mxu0 %v3043_v46  ;;  %2207 = vmatprep.subr.mxu1 %v3395_v53 }
 0x62d   :  { %1496 = vmatpush1.msra.mxu0 %v3047_v57  ;;  %2208 = vmatpush3.msra.mxu1 %v3164_v20  ;;  %v1653_v20 = vld [vmem:[%s3358_s2 + $0x30] sm:$0xff] }
 0x62e   :  { %1497 = vmatprep.subr.mxu0 %v3051_v47  ;;  %2209 = vmatprep.subr.mxu1 %v3395_v53 }
 0x62f   :  { %1498 = vmatpush1.msra.mxu0 %v3055_v2  ;;  %2210 = vmatpush3.msra.mxu1 %v3170_v21  ;;  %v1652_v21 = vld [vmem:[%s3358_s2 + $0x28] sm:$0xff] }
 0x630   :  { %1499 = vmatprep.subr.mxu0 %v3059_v48  ;;  %2211 = vmatprep.subr.mxu1 %v3395_v53 }
 0x631   :  { %1500 = vmatpush1.msra.mxu0 %v3063_v3  ;;  %2212 = vmatpush3.msra.mxu1 %v3176_v7  ;;  %v1466_v3 = vrot.slane %v3201_v23, 6  ;;  %v1651_v7 = vld [vmem:[%s3358_s2 + $0x20] sm:$0xff] }
 0x632   :  { %1501 = vmatprep.subr.mxu0 %v3423_v62  ;;  %2213 = vmatprep.subr.mxu1 %v3395_v53 }
 0x633   :  { %1502 = vmatpush1.msra.mxu0 %v3424_v54  ;;  %2214 = vmatpush3.msra.mxu1 %v3425_v61 }
 0x634   :  { %1503 = vmatprep.subr.mxu0 %v3426_v60  ;;  %2215 = vmatprep.subr.mxu1 %v3395_v53 }
 0x635   :  { %1504 = vmatpush1.msra.mxu0 %v3427_v42  ;;  %1537 = vmatprep.mubr.f32.mxu0 %v3395_v53 }
 0x636   :  { %2216 = vmatpush3.msra.mxu1 %v3428_v1  ;;  %2217 = vmatprep.mubr.msk.f32.mxu1 %vm2438_vm1, %v3395_v53 }
 0x637   :  { %2220 = vmatprep.subr.mxu0 %v3395_v53 }
 0x6d6   :  { %v1362_v25 = vpop.f32.mrf.mxu0  ;;  %v1433_v11 = vpop.f32.mrf.mxu1 }
 0x6d7   :  { %v1438_v28 = vrot.slane %v1362_v25, 4  ;;  %v1457_v45 = vadd.f32 %v3272_v63, %v1433_v11 }
 0x6d8   :  { %v1364_v55 = vpop.f32.mrf.mxu0  ;;  %v2184_v31 = vpop.f32.mrf.mxu1 }
 0x6d9   :  { %v1440_v56 = vadd.f32 %v1438_v28, %v3418_v9  ;;  %v1448_v59 = vrot.slane %v1364_v55, 4  ;;  %v1459_v46 = vrot.slane %v1457_v45, 4 }
 0x6db   :  { %v1774_v34 = vmul.f32 -1.442695, %v1440_v56  ;;  %v1450_v37 = vadd.f32 %v1448_v59, %v3419_v18 }
 0x6dd   :  { %2321 = vpow2.f32 %v1774_v34  ;;  %v1775_v19 = vmul.f32 -1.442695, %v1450_v37  ;;  %v1778_v37 = vld [vmem:[%s3358_s2 + $0x80] ss:$0 sm:$0xff] }
 0x6df   :  { %2323 = vpow2.f32 %v1775_v19 }
 0x6ea   :  { %v2322_v40 = vpop.eup %2321 }
 0x6eb   :  { %v1444_v12 = vadd.f32 1.0, %v2322_v40 }
 0x6ec   :  { %v2324_v43 = vpop.eup %2323 }
 0x6ed   :  { %2325 = vrcp.f32 %v1444_v12  ;;  %v1454_v44 = vadd.f32 1.0, %v2324_v43 }
 0x6ef   :  { %2327 = vrcp.f32 %v1454_v44 }
 0x6fa   :  { %v2326_v57 = vpop.eup %2325 }
 0x6fb   :  { %v1461_v47 = vmul.f32 %v2326_v57, %v1459_v46 }
 0x6fc   :  { %v2328_v48 = vpop.eup %2327 }
 0x6fd   :  { %v1462_v2 = vadd.f32 %v1461_v47, %v3420_v30  ;;  %v1464_v49 = vsub.f32 1.0, %v2328_v48  ;;  %v1468_v52 = vmul.f32 %v2328_v48, %v1466_v3 }
 0x6ff   :  { %2329 = vtanh.f32 %v1462_v2 }
 0x70c   :  { %v2330_v5 = vpop.eup %2329 }
 0x70d   :  { %v1465_v50 = vmul.f32 %v2330_v5, %v1464_v49 }
 0x70f   :  { %v3277_v58 = vadd.f32 %v1468_v52, %v1465_v50 }
 0x711   :  { %v1471_v39 = vrot.slane %v3277_v58, 4  ;;  %v1643_v28 = vrot.slane %v3277_v58, 6 }
 0x713   :  { %1538 = vmatmul.mubr.f32.vlgmr.msra.gmra.mxu0 %v1471_v39  ;;  %2218 = vmatmul.mubr.f32.vlgmr.msra.gmra.mxu1 %v1471_v39 }
 0x714   :  { %2252 = vmatprep.mubr.msk.f32.mxu0 %vm2438_vm1, %v3395_v53  ;;  %2221 = vmatpush3.msra.mxu0 %v1662_v41 }
 0x715   :  { %2222 = vmatprep.subr.mxu0 %v3395_v53 }
 0x716   :  { %2223 = vmatpush3.msra.mxu0 %v1661_v16 }
 0x717   :  { %2224 = vmatprep.subr.mxu0 %v3395_v53 }
 0x718   :  { %2225 = vmatpush3.msra.mxu0 %v1660_v14 }
 0x719   :  { %2226 = vmatprep.subr.mxu0 %v3395_v53 }
 0x71a   :  { %2227 = vmatpush3.msra.mxu0 %v1659_v51 }
 0x71b   :  { %2228 = vmatprep.subr.mxu0 %v3395_v53 }
 0x71c   :  { %2229 = vmatpush3.msra.mxu0 %v1658_v4 }
 0x71d   :  { %2230 = vmatprep.subr.mxu0 %v3395_v53 }
 0x71e   :  { %2231 = vmatpush3.msra.mxu0 %v1657_v10 }
 0x71f   :  { %2232 = vmatprep.subr.mxu0 %v3395_v53 }
 0x720   :  { %2233 = vmatpush3.msra.mxu0 %v1656_v13 }
 0x721   :  { %2234 = vmatprep.subr.mxu0 %v3395_v53 }
 0x722   :  { %2235 = vmatpush3.msra.mxu0 %v1655_v15 }
 0x723   :  { %2236 = vmatprep.subr.mxu0 %v3395_v53 }
 0x724   :  { %2237 = vmatpush3.msra.mxu0 %v1654_v17 }
 0x725   :  { %2238 = vmatprep.subr.mxu0 %v3395_v53 }
 0x726   :  { %2239 = vmatpush3.msra.mxu0 %v1653_v20 }
 0x727   :  { %2240 = vmatprep.subr.mxu0 %v3395_v53 }
 0x728   :  { %2241 = vmatpush3.msra.mxu0 %v1652_v21 }
 0x729   :  { %2242 = vmatprep.subr.mxu0 %v3395_v53 }
 0x72a   :  { %2243 = vmatpush3.msra.mxu0 %v1651_v7 }
 0x72b   :  { %2244 = vmatprep.subr.mxu0 %v3395_v53 }
 0x72c   :  { %2245 = vmatpush3.msra.mxu0 %v1650_v22 }
 0x72d   :  { %2246 = vmatprep.subr.mxu0 %v3395_v53 }
 0x72e   :  { %2247 = vmatpush3.msra.mxu0 %v1649_v26 }
 0x72f   :  { %2248 = vmatprep.subr.mxu0 %v3395_v53 }
 0x730   :  { %2249 = vmatpush3.msra.mxu0 %v1648_v38 }
 0x731   :  { %2250 = vmatprep.subr.mxu0 %v3395_v53 }
 0x732   :  { %2251 = vmatpush3.msra.mxu0 %v1647_v8 }
 0x7d3   :  { %v1539_v24 = vpop.f32.mrf.mxu0  ;;  %v1610_v27 = vpop.f32.mrf.mxu1 }
 0x7d4   :  { %v1615_v29 = vrot.slane %v1539_v24, 2  ;;  %v1634_v53 = vadd.f32 %v3272_v63, %v1610_v27 }
 0x7d5   :  { %v1541_v32 = vpop.f32.mrf.mxu0  ;;  %v2219_v33 = vpop.f32.mrf.mxu1 }
 0x7d6   :  { %v1617_v35 = vadd.f32 %v1615_v29, %v3418_v9  ;;  %v1625_v36 = vrot.slane %v1541_v32, 2  ;;  %v1636_v42 = vrot.slane %v1634_v53, 2 }
 0x7d8   :  { %v1776_v0 = vmul.f32 -1.442695, %v1617_v35  ;;  %v1627_v23 = vadd.f32 %v1625_v36, %v3419_v18 }
 0x7da   :  { %2331 = vpow2.f32 %v1776_v0  ;;  %v1777_v6 = vmul.f32 -1.442695, %v1627_v23 }
 0x7dc   :  { %2333 = vpow2.f32 %v1777_v6 }
 0x7e7   :  { %v2332_v62 = vpop.eup %2331 }
 0x7e8   :  { %v1621_v54 = vadd.f32 1.0, %v2332_v62 }
 0x7e9   :  { %v2334_v61 = vpop.eup %2333 }
 0x7ea   :  { %2335 = vrcp.f32 %v1621_v54  ;;  %v1631_v60 = vadd.f32 1.0, %v2334_v61 }
 0x7ec   :  { %2337 = vrcp.f32 %v1631_v60 }
 0x7f7   :  { %v2336_v1 = vpop.eup %2335 }
 0x7f8   :  { %v1638_v25 = vmul.f32 %v2336_v1, %v1636_v42 }
 0x7f9   :  { %v2338_v11 = vpop.eup %2337 }
 0x7fa   :  { %v1639_v9 = vadd.f32 %v1638_v25, %v3420_v30  ;;  %v1641_v18 = vsub.f32 1.0, %v2338_v11  ;;  %v1645_v56 = vmul.f32 %v2338_v11, %v1643_v28 }
 0x7fc   :  { %2339 = vtanh.f32 %v1639_v9 }
 0x809   :  { %v2340_v55 = vpop.eup %2339 }
 0x80a   :  { %v1642_v31 = vmul.f32 %v2340_v55, %v1641_v18 }
 0x80c   :  { %v1646_v34 = vadd.f32 %v1645_v56, %v1642_v31 }
 0x80e   :  { %v1669_v59 = vrot.slane %v1646_v34, 6 }
 0x810   :  { %2253 = vmatmul.mubr.f32.vlgmr.msra.gmra.mxu0 %v1669_v59 }
 0x8d0   :  { %v1737_v19 = vpop.f32.mrf.mxu0 }
 0x8d1   :  { %v1738_v30 = vadd.f32 %v1778_v37, %v1737_v19 }
 0x8d2   :  { %v2254_v40 = vpop.f32.mrf.mxu0 }
 0x8d3   :  { %1742 = vst.msk [vmem:[#allocation5] sm:$0x3] %vm1741_vm2, %v1738_v30 }
 0x8d4   :  { %2421 = shalt.err (!%p2418_p9)
}
 0x8d5   :  { %1752 = dma.vmem_to_hbm [thread:$0]  %s1750_s27, 32, %s3359_s3, [#allocation4]  }
 0x8d6   :  { %2432 = dma.done.wait [#allocation4], 32  }
 0x8d7   :  { %2433 = vsyncadd [#allocation4], 4294967264 }
 0x8d8   :  { %1756 = vsyncpa [#allocation3], 1 }
 0x8d9   :  { %1757 = vsyncpa [#allocation4], 1 }

</bundles_post_ra>
